<compile_context>
chip_gen: v7x
topology: tpu7x:2x2x1
jax: 0.10.0
libtpu: 0.0.40
codegen_flags: <defaults>
</compile_context>

<pallas_src>
import functools

import jax
import jax.numpy as jnp
from jax.experimental import pallas as pl
from jax.experimental.pallas import tpu as pltpu


def _round_up(v: int, m: int) -> int:
    return (v + m - 1) // m * m


def _knn_stream_kernel(q_ref, p_ref, idx_ref, bd_ref, bi_ref, *,
                       k: int, dilation: int, n_real: int, n_pad: int, nr: int):
    """One grid step: merge one streamed point chunk into the running top-k.

    q_ref  : (1, C, tq)    query tile (channels in sublanes, queries in lanes)
    p_ref  : (1, Npc, C)   streamed point chunk (points in sublanes)
    idx_ref: (1, kout, tq) int32 output (written on the last chunk only)
    bd_ref : (k, tq) f32   running best distances (VMEM scratch, persists)
    bi_ref : (k, tq) i32   running best indices   (VMEM scratch, persists)
    """
    c_dim = q_ref.shape[1]
    tq = q_ref.shape[2]
    npc = p_ref.shape[1]
    p_id = pl.program_id(2)

    # (Re)initialize the state at the first chunk of every (batch, query-tile).
    @pl.when(p_id == 0)
    def _():
        bd_ref[...] = jnp.full((k, tq), jnp.inf, dtype=jnp.float32)
        # Unique out-of-range indices so the tie/mask logic never collides.
        bi_ref[...] = n_pad + jax.lax.broadcasted_iota(jnp.int32, (k, tq), 0)

    # Hoisted per-grid-step values (loaded once, reused by every sub-chunk).
    use_mxu = c_dim >= 16
    if use_mxu:
        q_cm = q_ref[0, :, :]                                        # (C, tq)
        qn_row = jnp.sum(q_cm * q_cm, axis=0, keepdims=True)         # (1, tq)
    else:
        q_rows = [q_ref[0, c:c + 1, :] for c in range(c_dim)]        # C x (1, tq)
    iota_nr = jax.lax.broadcasted_iota(jnp.int32, (nr, tq), 0)       # (nr, tq)
    chunk_base = p_id * npc
    idx_big = jnp.int32(jnp.iinfo(jnp.int32).max)
    n_sub = npc // nr

    def merge(r, carry):
        bd, bi = carry                                               # (k, tq)
        off = pl.multiple_of(r * nr, nr)

        # Distances of nr points vs tq queries -- register resident.
        if use_mxu:
            p_sub = p_ref[0, pl.ds(off, nr), :]                      # (nr, C)
            pn_col = jnp.sum(p_sub * p_sub, axis=1, keepdims=True)   # (nr, 1)
            gram = jnp.dot(p_sub, q_cm, preferred_element_type=jnp.float32)
            dist = jnp.maximum(pn_col + qn_row - 2.0 * gram, 0.0)    # (nr, tq)
        else:
            d = p_ref[0, pl.ds(off, nr), 0:1] - q_rows[0]            # (nr, tq)
            dist = d * d
            for c in range(1, c_dim):
                d = p_ref[0, pl.ds(off, nr), c:c + 1] - q_rows[c]
                dist = dist + d * d

        gidx = iota_nr + (chunk_base + off)                          # global point idx
        if n_real < n_pad:                                           # mask padded points
            dist = jnp.where(gidx < n_real, dist, jnp.inf)

        # Candidate set = this sub-chunk U current best (chunk first keeps the
        # 8-sublane-aligned block aligned across the concat).
        all_d = jnp.concatenate([dist, bd], axis=0)                  # (nr+k, tq)
        all_i = jnp.concatenate([gidx, bi], axis=0)

        bd_rows, bi_rows = [], []
        for s in range(k):
            m = jnp.min(all_d, axis=0, keepdims=True)                # (1, tq)
            sel = jnp.min(jnp.where(all_d <= m, all_i, idx_big),
                          axis=0, keepdims=True)                     # smallest-index tie-break
            bd_rows.append(m)
            bi_rows.append(sel)
            if s + 1 < k:
                all_d = jnp.where(all_i == sel, jnp.inf, all_d)      # drop selected entry
        return (jnp.concatenate(bd_rows, axis=0),
                jnp.concatenate(bi_rows, axis=0))

    bd, bi = jax.lax.fori_loop(0, n_sub, merge, (bd_ref[...], bi_ref[...]))
    bd_ref[...] = bd
    bi_ref[...] = bi

    # After the last chunk: emit every dilation-th neighbor as lane-dense rows.
    @pl.when(p_id == pl.num_programs(2) - 1)
    def _():
        for r, s in enumerate(range(0, k, dilation)):
            idx_ref[0, r:r + 1, :] = bi_ref[s:s + 1, :]


def dilated_knn_graph(x, *, k: int = 9, dilation: int = 1):
    """x: [B, N, C] float -> dilated KNN indices [B, N, ceil(k/dilation)] int32."""
    B, N, C = x.shape
    if k > N:
        raise ValueError(f"k={k} must be <= number of points N={N}")
    if dilation < 1:
        raise ValueError("dilation must be >= 1")
    kout = len(range(0, k, dilation))

    x = x.astype(jnp.float32)

    # Query tile: lane-dense, fixed; merge-loop register pressure scales with tq.
    tq = 256
    n_pad = _round_up(N, tq)
    # Streamed point-chunk size (grid axis): coarse DMA granularity.
    npc = 512 if n_pad % 512 == 0 else 256
    if k > npc:
        raise ValueError(f"k={k} too large for this kernel (max {npc})")
    # Register sub-chunk: >= k so the very first merge already holds >= k real
    # candidates (keeps the unique-index masking exact); powers of two divide npc.
    nr = 32
    while nr < min(k, npc):
        nr *= 2

    if n_pad != N:
        x = jnp.pad(x, ((0, 0), (0, n_pad - N), (0, 0)))
    x_t = jnp.swapaxes(x, 1, 2)                      # (B, C, n_pad): lane-dense queries

    grid = (B, n_pad // tq, n_pad // npc)

    c_sub, c_lane = _round_up(C, 8), _round_up(C, 128)
    vmem_bytes = (2 * c_sub * tq * 4                 # query tile (double-buffered)
                  + 2 * npc * c_lane * 4             # streamed point chunk (double-buffered)
                  + 2 * _round_up(kout, 8) * tq * 4  # output tile
                  + _round_up(k, 8) * tq * 8         # top-k state scratch (f32 + i32)
                  + (4 << 20))                       # spill / compiler headroom
    vmem_limit = int(min(max(vmem_bytes, 4 << 20), 64 << 20))

    kernel = functools.partial(_knn_stream_kernel, k=k, dilation=dilation,
                               n_real=N, n_pad=n_pad, nr=nr)
    idx_kn = pl.pallas_call(
        kernel,
        out_shape=jax.ShapeDtypeStruct((B, kout, n_pad), jnp.int32),
        grid_spec=pltpu.PrefetchScalarGridSpec(
            num_scalar_prefetch=0,
            grid=grid,
            in_specs=[
                # Query tile: channels in sublanes, queries lane-dense;
                # resident across the streamed point-chunk axis.
                pl.BlockSpec((1, C, tq), lambda b, q, p: (b, 0, q)),
                # Streamed point chunk (innermost grid axis -> pipelined DMA).
                pl.BlockSpec((1, npc, C), lambda b, q, p: (b, p, 0)),
            ],
            out_specs=pl.BlockSpec((1, kout, tq), lambda b, q, p: (b, 0, q)),
            scratch_shapes=[pltpu.VMEM((k, tq), jnp.float32),
                            pltpu.VMEM((k, tq), jnp.int32)],
        ),
        compiler_params=pltpu.CompilerParams(
            dimension_semantics=("parallel", "parallel", "arbitrary"),
            vmem_limit_bytes=vmem_limit,
        ),
    )(x_t, x)

    # (B, kout, n_pad) -> (B, N, kout).  Indices are int32 (pytorch3d uses int64).
    return jnp.swapaxes(idx_kn, 1, 2)[:, :N, :]


if __name__ == "__main__":
    key = jax.random.PRNGKey(0)
    B, N, C = 2, 64, 3
    k, dilation = 9, 2
    x = jax.random.normal(key, (B, N, C), dtype=jnp.float32)

    idx = dilated_knn_graph(x, k=k, dilation=dilation)
    idx = jax.block_until_ready(idx)

    kout = len(range(0, k, dilation))
    assert idx.shape == (B, N, kout), idx.shape
    assert idx.dtype == jnp.int32
    assert bool(jnp.all((idx >= 0) & (idx < N)))

    # Pure-JAX reference; compare neighbor *distances* (tolerant to tie order).
    diff = x[:, :, None, :] - x[:, None, :, :]
    dist_ref = jnp.sum(diff * diff, axis=-1)                          # (B, N, N)
    ref_idx = jnp.argsort(dist_ref, axis=-1)[:, :, :k][:, :, ::dilation]
    d_kernel = jnp.take_along_axis(dist_ref, idx, axis=-1)
    d_ref = jnp.take_along_axis(dist_ref, ref_idx, axis=-1)
    assert bool(jnp.allclose(d_kernel, d_ref, atol=1e-5, rtol=1e-5)), (
        float(jnp.max(jnp.abs(d_kernel - d_ref))))

    print("KERNEL_OK")
</pallas_src>

<mosaic_0001>
module attributes {stable_mosaic.version = 11 : i64} {
  func.func @_knn_stream_kernel(%arg0: i32, %arg1: i32, %arg2: i32, %arg3: memref<1x3x256xf32, #tpu.memory_space<vmem>>, %arg4: memref<1x256x3xf32, #tpu.memory_space<vmem>>, %arg5: memref<1x5x256xi32, #tpu.memory_space<vmem>>, %arg6: memref<9x256xf32, #tpu.memory_space<vmem>>, %arg7: memref<9x256xi32, #tpu.memory_space<vmem>>) attributes {dimension_semantics = [#tpu.dimension_semantics<parallel>, #tpu.dimension_semantics<parallel>, #tpu.dimension_semantics<arbitrary>], iteration_bounds = array<i64: 2, 1, 1>, scalar_prefetch = 0 : i64, scratch_operands = 2 : i64, tpu.core_type = #tpu.core_type<tc>, window_params = [{transform_indices = @transform_0, window_bounds = array<i64: 1, 3, 256>}, {transform_indices = @transform_1, window_bounds = array<i64: 1, 256, 3>}, {transform_indices = @transform_2, window_bounds = array<i64: 1, 5, 256>}]} {
    %c0_i32 = arith.constant 0 : i32
    %0 = arith.cmpi eq, %arg2, %c0_i32 : i32
    %1 = arith.extui %0 : i1 to i32
    %c0_i32_0 = arith.constant 0 : i32
    %2 = arith.cmpi ne, %1, %c0_i32_0 : i32
    scf.if %2 {
      %cst = arith.constant 0x7F800000 : f32
      %20 = vector.broadcast %cst : f32 to vector<9x256xf32>
      %c0_19 = arith.constant 0 : index
      %c0_20 = arith.constant 0 : index
      %21 = vector.load %arg6[%c0_19, %c0_20] : memref<9x256xf32, #tpu.memory_space<vmem>>, vector<9x256xf32>
      tpu.vector_store %arg6[%c0_19, %c0_20], %20 {strides = array<i32>} : memref<9x256xf32, #tpu.memory_space<vmem>>, vector<9x256xf32>,
      %22 = tpu.iota {dimensions = array<i32: 0>} : vector<9x256xi32>
      %c256_i32_21 = arith.constant 256 : i32
      %23 = vector.broadcast %c256_i32_21 : i32 to vector<9x256xi32>
      %24 = arith.addi %23, %22 : vector<9x256xi32>
      %c0_22 = arith.constant 0 : index
      %c0_23 = arith.constant 0 : index
      %25 = vector.load %arg7[%c0_22, %c0_23] : memref<9x256xi32, #tpu.memory_space<vmem>>, vector<9x256xi32>
      tpu.vector_store %arg7[%c0_22, %c0_23], %24 {strides = array<i32>} : memref<9x256xi32, #tpu.memory_space<vmem>>, vector<9x256xi32>,
    } else {
    }
    %c0 = arith.constant 0 : index
    %c0_1 = arith.constant 0 : index
    %c0_2 = arith.constant 0 : index
    %3 = vector.load %arg3[%c0, %c0_1, %c0_2] : memref<1x3x256xf32, #tpu.memory_space<vmem>>, vector<1x1x256xf32>
    %4 = vector.shape_cast %3 : vector<1x1x256xf32> to vector<1x256xf32>
    %c0_3 = arith.constant 0 : index
    %c1 = arith.constant 1 : index
    %c0_4 = arith.constant 0 : index
    %5 = vector.load %arg3[%c0_3, %c1, %c0_4] : memref<1x3x256xf32, #tpu.memory_space<vmem>>, vector<1x1x256xf32>
    %6 = vector.shape_cast %5 : vector<1x1x256xf32> to vector<1x256xf32>
    %c0_5 = arith.constant 0 : index
    %c2 = arith.constant 2 : index
    %c0_6 = arith.constant 0 : index
    %7 = vector.load %arg3[%c0_5, %c2, %c0_6] : memref<1x3x256xf32, #tpu.memory_space<vmem>>, vector<1x1x256xf32>
    %8 = vector.shape_cast %7 : vector<1x1x256xf32> to vector<1x256xf32>
    %9 = tpu.iota {dimensions = array<i32: 0>} : vector<32x256xi32>
    %c256_i32 = arith.constant 256 : i32
    %10 = arith.muli %arg2, %c256_i32 : i32
    %c0_7 = arith.constant 0 : index
    %c0_8 = arith.constant 0 : index
    %11 = vector.load %arg6[%c0_7, %c0_8] : memref<9x256xf32, #tpu.memory_space<vmem>>, vector<9x256xf32>
    %c0_9 = arith.constant 0 : index
    %c0_10 = arith.constant 0 : index
    %12 = vector.load %arg7[%c0_9, %c0_10] : memref<9x256xi32, #tpu.memory_space<vmem>>, vector<9x256xi32>
    %c2147483647_i32 = arith.constant 2147483647 : i32
    %c0_i32_11 = arith.constant 0 : i32
    %c8_i32 = arith.constant 8 : i32
    %13 = arith.addi %c0_i32_11, %c8_i32 : i32
    %c1_i32 = arith.constant 1 : i32
    %14:2 = scf.for %arg8 = %c0_i32_11 to %13 step %c1_i32 iter_args(%arg9 = %11, %arg10 = %12) -> (vector<9x256xf32>, vector<9x256xi32>)  : i32 {
      %c32_i32 = arith.constant 32 : i32
      %20 = arith.muli %arg8, %c32_i32 : i32
      %21 = tpu.assume_multiple %20, 32 : i32
      %c0_19 = arith.constant 0 : index
      %22 = arith.index_cast %21 : i32 to index
      %c0_20 = arith.constant 0 : index
      %23 = vector.load %arg4[%c0_19, %22, %c0_20] : memref<1x256x3xf32, #tpu.memory_space<vmem>>, vector<1x32x1xf32>
      %24 = vector.shape_cast %23 : vector<1x32x1xf32> to vector<32x1xf32>
      %25 = vector.broadcast %24 : vector<32x1xf32> to vector<32x256xf32>
      %26 = vector.broadcast %4 : vector<1x256xf32> to vector<32x256xf32>
      %27 = arith.subf %25, %26 : vector<32x256xf32>
      %28 = arith.mulf %27, %27 : vector<32x256xf32>
      %c0_21 = arith.constant 0 : index
      %29 = arith.index_cast %21 : i32 to index
      %c1_22 = arith.constant 1 : index
      %30 = vector.load %arg4[%c0_21, %29, %c1_22] : memref<1x256x3xf32, #tpu.memory_space<vmem>>, vector<1x32x1xf32>
      %31 = vector.shape_cast %30 : vector<1x32x1xf32> to vector<32x1xf32>
      %32 = vector.broadcast %31 : vector<32x1xf32> to vector<32x256xf32>
      %33 = vector.broadcast %6 : vector<1x256xf32> to vector<32x256xf32>
      %34 = arith.subf %32, %33 : vector<32x256xf32>
      %35 = arith.mulf %34, %34 : vector<32x256xf32>
      %36 = arith.addf %28, %35 : vector<32x256xf32>
      %c0_23 = arith.constant 0 : index
      %37 = arith.index_cast %21 : i32 to index
      %c2_24 = arith.constant 2 : index
      %38 = vector.load %arg4[%c0_23, %37, %c2_24] : memref<1x256x3xf32, #tpu.memory_space<vmem>>, vector<1x32x1xf32>
      %39 = vector.shape_cast %38 : vector<1x32x1xf32> to vector<32x1xf32>
      %40 = vector.broadcast %39 : vector<32x1xf32> to vector<32x256xf32>
      %41 = vector.broadcast %8 : vector<1x256xf32> to vector<32x256xf32>
      %42 = arith.subf %40, %41 : vector<32x256xf32>
      %43 = arith.mulf %42, %42 : vector<32x256xf32>
      %44 = arith.addf %36, %43 : vector<32x256xf32>
      %45 = arith.addi %10, %21 : i32
      %46 = vector.broadcast %45 : i32 to vector<32x256xi32>
      %47 = arith.addi %9, %46 : vector<32x256xi32>
      %c64_i32 = arith.constant 64 : i32
      %48 = vector.broadcast %c64_i32 : i32 to vector<32x256xi32>
      %49 = arith.cmpi slt, %47, %48 : vector<32x256xi32>
      %cst = arith.constant 0x7F800000 : f32
      %50 = vector.broadcast %cst : f32 to vector<32x256xf32>
      %51 = arith.select %49, %44, %50 : vector<32x256xi1>, vector<32x256xf32>
      %52 = tpu.concatenate %51, %arg9 in 0 : vector<32x256xf32>, vector<9x256xf32> -> vector<41x256xf32>
      %53 = tpu.concatenate %47, %arg10 in 0 : vector<32x256xi32>, vector<9x256xi32> -> vector<41x256xi32>
      %cst_25 = arith.constant dense<0x7F800000> : vector<256xf32>
      %54 = vector.multi_reduction <minimumf>, %52, %cst_25 [0] : vector<41x256xf32> to vector<256xf32>
      %55 = vector.shape_cast %54 : vector<256xf32> to vector<1x256xf32>
      %56 = vector.broadcast %55 : vector<1x256xf32> to vector<41x256xf32>
      %57 = arith.cmpf ole, %52, %56 : vector<41x256xf32>
      %58 = vector.broadcast %c2147483647_i32 : i32 to vector<41x256xi32>
      %59 = arith.select %57, %53, %58 : vector<41x256xi1>, vector<41x256xi32>
      %cst_26 = arith.constant dense<2147483647> : vector<256xi32>
      %60 = vector.multi_reduction <minsi>, %59, %cst_26 [0] : vector<41x256xi32> to vector<256xi32>
      %61 = vector.shape_cast %60 : vector<256xi32> to vector<1x256xi32>
      %62 = vector.broadcast %61 : vector<1x256xi32> to vector<41x256xi32>
      %63 = arith.cmpi eq, %53, %62 : vector<41x256xi32>
      %cst_27 = arith.constant 0x7F800000 : f32
      %64 = vector.broadcast %cst_27 : f32 to vector<41x256xf32>
      %65 = arith.select %63, %64, %52 : vector<41x256xi1>, vector<41x256xf32>
      %cst_28 = arith.constant dense<0x7F800000> : vector<256xf32>
      %66 = vector.multi_reduction <minimumf>, %65, %cst_28 [0] : vector<41x256xf32> to vector<256xf32>
      %67 = vector.shape_cast %66 : vector<256xf32> to vector<1x256xf32>
      %68 = vector.broadcast %67 : vector<1x256xf32> to vector<41x256xf32>
      %69 = arith.cmpf ole, %65, %68 : vector<41x256xf32>
      %70 = vector.broadcast %c2147483647_i32 : i32 to vector<41x256xi32>
      %71 = arith.select %69, %53, %70 : vector<41x256xi1>, vector<41x256xi32>
      %cst_29 = arith.constant dense<2147483647> : vector<256xi32>
      %72 = vector.multi_reduction <minsi>, %71, %cst_29 [0] : vector<41x256xi32> to vector<256xi32>
      %73 = vector.shape_cast %72 : vector<256xi32> to vector<1x256xi32>
      %74 = vector.broadcast %73 : vector<1x256xi32> to vector<41x256xi32>
      %75 = arith.cmpi eq, %53, %74 : vector<41x256xi32>
      %cst_30 = arith.constant 0x7F800000 : f32
      %76 = vector.broadcast %cst_30 : f32 to vector<41x256xf32>
      %77 = arith.select %75, %76, %65 : vector<41x256xi1>, vector<41x256xf32>
      %cst_31 = arith.constant dense<0x7F800000> : vector<256xf32>
      %78 = vector.multi_reduction <minimumf>, %77, %cst_31 [0] : vector<41x256xf32> to vector<256xf32>
      %79 = vector.shape_cast %78 : vector<256xf32> to vector<1x256xf32>
      %80 = vector.broadcast %79 : vector<1x256xf32> to vector<41x256xf32>
      %81 = arith.cmpf ole, %77, %80 : vector<41x256xf32>
      %82 = vector.broadcast %c2147483647_i32 : i32 to vector<41x256xi32>
      %83 = arith.select %81, %53, %82 : vector<41x256xi1>, vector<41x256xi32>
      %cst_32 = arith.constant dense<2147483647> : vector<256xi32>
      %84 = vector.multi_reduction <minsi>, %83, %cst_32 [0] : vector<41x256xi32> to vector<256xi32>
      %85 = vector.shape_cast %84 : vector<256xi32> to vector<1x256xi32>
      %86 = vector.broadcast %85 : vector<1x256xi32> to vector<41x256xi32>
      %87 = arith.cmpi eq, %53, %86 : vector<41x256xi32>
      %cst_33 = arith.constant 0x7F800000 : f32
      %88 = vector.broadcast %cst_33 : f32 to vector<41x256xf32>
      %89 = arith.select %87, %88, %77 : vector<41x256xi1>, vector<41x256xf32>
      %cst_34 = arith.constant dense<0x7F800000> : vector<256xf32>
      %90 = vector.multi_reduction <minimumf>, %89, %cst_34 [0] : vector<41x256xf32> to vector<256xf32>
      %91 = vector.shape_cast %90 : vector<256xf32> to vector<1x256xf32>
      %92 = vector.broadcast %91 : vector<1x256xf32> to vector<41x256xf32>
      %93 = arith.cmpf ole, %89, %92 : vector<41x256xf32>
      %94 = vector.broadcast %c2147483647_i32 : i32 to vector<41x256xi32>
      %95 = arith.select %93, %53, %94 : vector<41x256xi1>, vector<41x256xi32>
      %cst_35 = arith.constant dense<2147483647> : vector<256xi32>
      %96 = vector.multi_reduction <minsi>, %95, %cst_35 [0] : vector<41x256xi32> to vector<256xi32>
      %97 = vector.shape_cast %96 : vector<256xi32> to vector<1x256xi32>
      %98 = vector.broadcast %97 : vector<1x256xi32> to vector<41x256xi32>
      %99 = arith.cmpi eq, %53, %98 : vector<41x256xi32>
      %cst_36 = arith.constant 0x7F800000 : f32
      %100 = vector.broadcast %cst_36 : f32 to vector<41x256xf32>
      %101 = arith.select %99, %100, %89 : vector<41x256xi1>, vector<41x256xf32>
      %cst_37 = arith.constant dense<0x7F800000> : vector<256xf32>
      %102 = vector.multi_reduction <minimumf>, %101, %cst_37 [0] : vector<41x256xf32> to vector<256xf32>
      %103 = vector.shape_cast %102 : vector<256xf32> to vector<1x256xf32>
      %104 = vector.broadcast %103 : vector<1x256xf32> to vector<41x256xf32>
      %105 = arith.cmpf ole, %101, %104 : vector<41x256xf32>
      %106 = vector.broadcast %c2147483647_i32 : i32 to vector<41x256xi32>
      %107 = arith.select %105, %53, %106 : vector<41x256xi1>, vector<41x256xi32>
      %cst_38 = arith.constant dense<2147483647> : vector<256xi32>
      %108 = vector.multi_reduction <minsi>, %107, %cst_38 [0] : vector<41x256xi32> to vector<256xi32>
      %109 = vector.shape_cast %108 : vector<256xi32> to vector<1x256xi32>
      %110 = vector.broadcast %109 : vector<1x256xi32> to vector<41x256xi32>
      %111 = arith.cmpi eq, %53, %110 : vector<41x256xi32>
      %cst_39 = arith.constant 0x7F800000 : f32
      %112 = vector.broadcast %cst_39 : f32 to vector<41x256xf32>
      %113 = arith.select %111, %112, %101 : vector<41x256xi1>, vector<41x256xf32>
      %cst_40 = arith.constant dense<0x7F800000> : vector<256xf32>
      %114 = vector.multi_reduction <minimumf>, %113, %cst_40 [0] : vector<41x256xf32> to vector<256xf32>
      %115 = vector.shape_cast %114 : vector<256xf32> to vector<1x256xf32>
      %116 = vector.broadcast %115 : vector<1x256xf32> to vector<41x256xf32>
      %117 = arith.cmpf ole, %113, %116 : vector<41x256xf32>
      %118 = vector.broadcast %c2147483647_i32 : i32 to vector<41x256xi32>
      %119 = arith.select %117, %53, %118 : vector<41x256xi1>, vector<41x256xi32>
      %cst_41 = arith.constant dense<2147483647> : vector<256xi32>
      %120 = vector.multi_reduction <minsi>, %119, %cst_41 [0] : vector<41x256xi32> to vector<256xi32>
      %121 = vector.shape_cast %120 : vector<256xi32> to vector<1x256xi32>
      %122 = vector.broadcast %121 : vector<1x256xi32> to vector<41x256xi32>
      %123 = arith.cmpi eq, %53, %122 : vector<41x256xi32>
      %cst_42 = arith.constant 0x7F800000 : f32
      %124 = vector.broadcast %cst_42 : f32 to vector<41x256xf32>
      %125 = arith.select %123, %124, %113 : vector<41x256xi1>, vector<41x256xf32>
      %cst_43 = arith.constant dense<0x7F800000> : vector<256xf32>
      %126 = vector.multi_reduction <minimumf>, %125, %cst_43 [0] : vector<41x256xf32> to vector<256xf32>
      %127 = vector.shape_cast %126 : vector<256xf32> to vector<1x256xf32>
      %128 = vector.broadcast %127 : vector<1x256xf32> to vector<41x256xf32>
      %129 = arith.cmpf ole, %125, %128 : vector<41x256xf32>
      %130 = vector.broadcast %c2147483647_i32 : i32 to vector<41x256xi32>
      %131 = arith.select %129, %53, %130 : vector<41x256xi1>, vector<41x256xi32>
      %cst_44 = arith.constant dense<2147483647> : vector<256xi32>
      %132 = vector.multi_reduction <minsi>, %131, %cst_44 [0] : vector<41x256xi32> to vector<256xi32>
      %133 = vector.shape_cast %132 : vector<256xi32> to vector<1x256xi32>
      %134 = vector.broadcast %133 : vector<1x256xi32> to vector<41x256xi32>
      %135 = arith.cmpi eq, %53, %134 : vector<41x256xi32>
      %cst_45 = arith.constant 0x7F800000 : f32
      %136 = vector.broadcast %cst_45 : f32 to vector<41x256xf32>
      %137 = arith.select %135, %136, %125 : vector<41x256xi1>, vector<41x256xf32>
      %cst_46 = arith.constant dense<0x7F800000> : vector<256xf32>
      %138 = vector.multi_reduction <minimumf>, %137, %cst_46 [0] : vector<41x256xf32> to vector<256xf32>
      %139 = vector.shape_cast %138 : vector<256xf32> to vector<1x256xf32>
      %140 = vector.broadcast %139 : vector<1x256xf32> to vector<41x256xf32>
      %141 = arith.cmpf ole, %137, %140 : vector<41x256xf32>
      %142 = vector.broadcast %c2147483647_i32 : i32 to vector<41x256xi32>
      %143 = arith.select %141, %53, %142 : vector<41x256xi1>, vector<41x256xi32>
      %cst_47 = arith.constant dense<2147483647> : vector<256xi32>
      %144 = vector.multi_reduction <minsi>, %143, %cst_47 [0] : vector<41x256xi32> to vector<256xi32>
      %145 = vector.shape_cast %144 : vector<256xi32> to vector<1x256xi32>
      %146 = vector.broadcast %145 : vector<1x256xi32> to vector<41x256xi32>
      %147 = arith.cmpi eq, %53, %146 : vector<41x256xi32>
      %cst_48 = arith.constant 0x7F800000 : f32
      %148 = vector.broadcast %cst_48 : f32 to vector<41x256xf32>
      %149 = arith.select %147, %148, %137 : vector<41x256xi1>, vector<41x256xf32>
      %cst_49 = arith.constant dense<0x7F800000> : vector<256xf32>
      %150 = vector.multi_reduction <minimumf>, %149, %cst_49 [0] : vector<41x256xf32> to vector<256xf32>
      %151 = vector.shape_cast %150 : vector<256xf32> to vector<1x256xf32>
      %152 = vector.broadcast %151 : vector<1x256xf32> to vector<41x256xf32>
      %153 = arith.cmpf ole, %149, %152 : vector<41x256xf32>
      %154 = vector.broadcast %c2147483647_i32 : i32 to vector<41x256xi32>
      %155 = arith.select %153, %53, %154 : vector<41x256xi1>, vector<41x256xi32>
      %cst_50 = arith.constant dense<2147483647> : vector<256xi32>
      %156 = vector.multi_reduction <minsi>, %155, %cst_50 [0] : vector<41x256xi32> to vector<256xi32>
      %157 = vector.shape_cast %156 : vector<256xi32> to vector<1x256xi32>
      %158 = tpu.concatenate %55, %67, %79, %91, %103, %115, %127, %139, %151 in 0 : vector<1x256xf32>, vector<1x256xf32>, vector<1x256xf32>, vector<1x256xf32>, vector<1x256xf32>, vector<1x256xf32>, vector<1x256xf32>, vector<1x256xf32>, vector<1x256xf32> -> vector<9x256xf32>
      %159 = tpu.concatenate %61, %73, %85, %97, %109, %121, %133, %145, %157 in 0 : vector<1x256xi32>, vector<1x256xi32>, vector<1x256xi32>, vector<1x256xi32>, vector<1x256xi32>, vector<1x256xi32>, vector<1x256xi32>, vector<1x256xi32>, vector<1x256xi32> -> vector<9x256xi32>
      scf.yield %158, %159 : vector<9x256xf32>, vector<9x256xi32>
    }
    %c8_i32_12 = arith.constant 8 : i32
    %c0_13 = arith.constant 0 : index
    %c0_14 = arith.constant 0 : index
    %15 = vector.load %arg6[%c0_13, %c0_14] : memref<9x256xf32, #tpu.memory_space<vmem>>, vector<9x256xf32>
    tpu.vector_store %arg6[%c0_13, %c0_14], %14#0 {strides = array<i32>} : memref<9x256xf32, #tpu.memory_space<vmem>>, vector<9x256xf32>,
    %c0_15 = arith.constant 0 : index
    %c0_16 = arith.constant 0 : index
    %16 = vector.load %arg7[%c0_15, %c0_16] : memref<9x256xi32, #tpu.memory_space<vmem>>, vector<9x256xi32>
    tpu.vector_store %arg7[%c0_15, %c0_16], %14#1 {strides = array<i32>} : memref<9x256xi32, #tpu.memory_space<vmem>>, vector<9x256xi32>,
    %c0_i32_17 = arith.constant 0 : i32
    %17 = arith.cmpi eq, %arg2, %c0_i32_17 : i32
    %18 = arith.extui %17 : i1 to i32
    %c0_i32_18 = arith.constant 0 : i32
    %19 = arith.cmpi ne, %18, %c0_i32_18 : i32
    scf.if %19 {
      %c0_19 = arith.constant 0 : index
      %c0_20 = arith.constant 0 : index
      %20 = vector.load %arg7[%c0_19, %c0_20] : memref<9x256xi32, #tpu.memory_space<vmem>>, vector<1x256xi32>
      %c0_21 = arith.constant 0 : index
      %c0_22 = arith.constant 0 : index
      %c0_23 = arith.constant 0 : index
      %21 = vector.load %arg5[%c0_21, %c0_22, %c0_23] : memref<1x5x256xi32, #tpu.memory_space<vmem>>, vector<1x1x256xi32>
      %22 = vector.shape_cast %21 : vector<1x1x256xi32> to vector<1x256xi32>
      %23 = vector.shape_cast %20 : vector<1x256xi32> to vector<1x1x256xi32>
      tpu.vector_store %arg5[%c0_21, %c0_22, %c0_23], %23 {strides = array<i32>} : memref<1x5x256xi32, #tpu.memory_space<vmem>>, vector<1x1x256xi32>,
      %c2_24 = arith.constant 2 : index
      %c0_25 = arith.constant 0 : index
      %24 = vector.load %arg7[%c2_24, %c0_25] : memref<9x256xi32, #tpu.memory_space<vmem>>, vector<1x256xi32>
      %c0_26 = arith.constant 0 : index
      %c1_27 = arith.constant 1 : index
      %c0_28 = arith.constant 0 : index
      %25 = vector.load %arg5[%c0_26, %c1_27, %c0_28] : memref<1x5x256xi32, #tpu.memory_space<vmem>>, vector<1x1x256xi32>
      %26 = vector.shape_cast %25 : vector<1x1x256xi32> to vector<1x256xi32>
      %27 = vector.shape_cast %24 : vector<1x256xi32> to vector<1x1x256xi32>
      tpu.vector_store %arg5[%c0_26, %c1_27, %c0_28], %27 {strides = array<i32>} : memref<1x5x256xi32, #tpu.memory_space<vmem>>, vector<1x1x256xi32>,
      %c4 = arith.constant 4 : index
      %c0_29 = arith.constant 0 : index
      %28 = vector.load %arg7[%c4, %c0_29] : memref<9x256xi32, #tpu.memory_space<vmem>>, vector<1x256xi32>
      %c0_30 = arith.constant 0 : index
      %c2_31 = arith.constant 2 : index
      %c0_32 = arith.constant 0 : index
      %29 = vector.load %arg5[%c0_30, %c2_31, %c0_32] : memref<1x5x256xi32, #tpu.memory_space<vmem>>, vector<1x1x256xi32>
      %30 = vector.shape_cast %29 : vector<1x1x256xi32> to vector<1x256xi32>
      %31 = vector.shape_cast %28 : vector<1x256xi32> to vector<1x1x256xi32>
      tpu.vector_store %arg5[%c0_30, %c2_31, %c0_32], %31 {strides = array<i32>} : memref<1x5x256xi32, #tpu.memory_space<vmem>>, vector<1x1x256xi32>,
      %c6 = arith.constant 6 : index
      %c0_33 = arith.constant 0 : index
      %32 = vector.load %arg7[%c6, %c0_33] : memref<9x256xi32, #tpu.memory_space<vmem>>, vector<1x256xi32>
      %c0_34 = arith.constant 0 : index
      %c3 = arith.constant 3 : index
      %c0_35 = arith.constant 0 : index
      %33 = vector.load %arg5[%c0_34, %c3, %c0_35] : memref<1x5x256xi32, #tpu.memory_space<vmem>>, vector<1x1x256xi32>
      %34 = vector.shape_cast %33 : vector<1x1x256xi32> to vector<1x256xi32>
      %35 = vector.shape_cast %32 : vector<1x256xi32> to vector<1x1x256xi32>
      tpu.vector_store %arg5[%c0_34, %c3, %c0_35], %35 {strides = array<i32>} : memref<1x5x256xi32, #tpu.memory_space<vmem>>, vector<1x1x256xi32>,
      %c8 = arith.constant 8 : index
      %c0_36 = arith.constant 0 : index
      %36 = vector.load %arg7[%c8, %c0_36] : memref<9x256xi32, #tpu.memory_space<vmem>>, vector<1x256xi32>
      %c0_37 = arith.constant 0 : index
      %c4_38 = arith.constant 4 : index
      %c0_39 = arith.constant 0 : index
      %37 = vector.load %arg5[%c0_37, %c4_38, %c0_39] : memref<1x5x256xi32, #tpu.memory_space<vmem>>, vector<1x1x256xi32>
      %38 = vector.shape_cast %37 : vector<1x1x256xi32> to vector<1x256xi32>
      %39 = vector.shape_cast %36 : vector<1x256xi32> to vector<1x1x256xi32>
      tpu.vector_store %arg5[%c0_37, %c4_38, %c0_39], %39 {strides = array<i32>} : memref<1x5x256xi32, #tpu.memory_space<vmem>>, vector<1x1x256xi32>,
    } else {
    }
    return
  }
  func.func @transform_0(%arg0: i32, %arg1: i32, %arg2: i32) -> (i32, i32, i32) {
    %c0_i32 = arith.constant 0 : i32
    %c0_i32_0 = arith.constant 0 : i32
    return %arg0, %c0_i32, %arg1 : i32, i32, i32
  }
  func.func @transform_1(%arg0: i32, %arg1: i32, %arg2: i32) -> (i32, i32, i32) {
    %c0_i32 = arith.constant 0 : i32
    %c0_i32_0 = arith.constant 0 : i32
    return %arg0, %arg2, %c0_i32 : i32, i32, i32
  }
  func.func @transform_2(%arg0: i32, %arg1: i32, %arg2: i32) -> (i32, i32, i32) {
    %c0_i32 = arith.constant 0 : i32
    %c0_i32_0 = arith.constant 0 : i32
    return %arg0, %c0_i32, %arg1 : i32, i32, i32
  }
}

</mosaic_0001>

<bundles_post_ra>
// kernel: tpu_custom_call.1
= control target key start
LH: loop header
LB: loop body
LE: loop exit
PB: predicated region body
PF: predicated region fallthrough
CT: control target
= control target key end

     0   :  { %s1889_s9 = smov 0   ;;  %s1891_s10 = smov 0   ;;  %s2952_s0 = inlined_call_operand.vmem [shape: f32[2,3,256], index: 0, kind: input, shape index: {}]   ;;  %s2953_s1 = inlined_call_operand.vmem [shape: f32[2,256,3], index: 1, kind: input, shape index: {}]   ;;  %s2954_s2 = inlined_call_operand.vmem [shape: s32[2,5,256], index: 2, kind: output, shape index: {}]  }
   0x1   :  { %s1893_s11 = smov 0  }
   0x2 LB: > { %s31_s12 = sadd.s32 1, %s1828_s10  ;;  %p1649_p0 = scmp.ge.s32.totalorder %s1832_s11, 1  ;;  %s1832_s11 = sphi %s1893_s11, %s12_s11   ;;  %s1828_s10 = sphi %s1891_s10, %s2966_s10   ;;  %s1824_s9 = sphi %s1889_s9, %s2965_s9  }
   0x3   : > { %p33_p1 = scmp.ge.s32.totalorder %s31_s12, 2  ;;  %p157_p2 = scmp.lt.s32.totalorder %s1832_s11, 3 }
   0x5   : > { %s2968_s12 = smov (%p33_p1, %s31_s12), 0  ;;  %p158_p3 = pnand %p1649_p0, %p157_p2 }
   0x6   : > { %p197_p4 = scmp.lt.s32.totalorder (!%p158_p3), %s1824_s9, 1  ;;  %v234_v0 = vlaneseq (!%p158_p3)  ;;  %v1870_v1 = vmov (!%p158_p3), inf   ;;  %v1952_v16 = vmov (!%p158_p3), inf   ;;  %v1954_v17 = vmov (!%p158_p3), inf   ;;  %s1956_s25 = smov (!%p158_p3), 0  }
   0x7   : > { %161 = sbr.rel (%p158_p3) target bundleno = 633 (0x279), region = 28  ;;  %232 = vst [vmem:[#allocation2 + $0x10] sm:$0x1] (!%p158_p3), %v1870_v1  ;;  %233 = vst [vmem:[#allocation2 + $0x18] sm:$0x1] (!%p158_p3), %v1870_v1 }
   0x8   : > { %v1908_v2 = vshrl.u32 (!%p158_p3), %v234_v0, 7 }
   0xa   : > { %v237_v3 = vadd.s32 (!%p158_p3), 256, %v1908_v2   ;;  %v1912_v4 = vadd.s32 (!%p158_p3), 16, %v1908_v2  ;;  %v1915_v5 = vadd.s32 (!%p158_p3), 24, %v1908_v2  ;;  %v1918_v6 = vadd.s32 (!%p158_p3), 8, %v1908_v2 }
   0xc   : > { %239 = vst [vmem:[#allocation3] sm:$0xff] (!%p158_p3), %v237_v3  ;;  %240 = vst [vmem:[#allocation3 + $0x8] sm:$0xff] (!%p158_p3), %v237_v3  ;;  %v238_v8 = vadd.s32 (!%p158_p3), 256, %v1918_v6  ;;  %v2955_v15 = vmov (!%p158_p3), %v237_v3 }
   0xe   : > { %s2970_s9 = smov (!%p197_p4, %s1824_s9), 1  ;;  %v256_v11 = vld [vmem:[#allocation2 + $0x10] sm:$0x1]   ;;  %v257_v12 = vld [vmem:[#allocation2 + $0x18] sm:$0x1]  }
   0xf   : > { %s1665_s13 = sshll.u32 %s2970_s9, 3  ;;  %s1666_s14 = sshll.u32 %s2970_s9, 8  ;;  %241 = vst [vmem:[#allocation3 + $0x10] sm:$0x1] %v238_v8  ;;  %242 = vst [vmem:[#allocation3 + $0x18] sm:$0x1] %v238_v8 }
  0x10   : > { %s204_s17 = scalar_lea.vmem %s2952_s0, %s1665_s13  ;;  %s1926_s20 = scalar_lea.vmem %s2953_s1, %s1666_s14 }
  0x11   : > { %s1667_s21 = sshll.u32 %s2970_s9, 4  ;;  %v1928_v7 = vld [vmem:[%s204_s17] ss:$4 sm:$0x3] }
  0x12   : > { %s1934_s24 = scalar_lea.vmem %s2954_s2, %s1667_s21  ;;  %v1936_v9 = vld [vmem:[%s204_s17 + $0x1] ss:$4 sm:$0x3]  ;;  %v1938_v10 = vld [vmem:[%s204_s17 + $0x2] ss:$4 sm:$0x3] }
  0x16   : > { %v260_v13 = vld [vmem:[#allocation3 + $0x10] sm:$0x1]   ;;  %v261_v14 = vld [vmem:[#allocation3 + $0x18] sm:$0x1]  }
  0x17 LB: >> { %v1871_v18 = vmov 0   ;;  %s1658_s26 = sshll.u32 %s1868_s25, 5  ;;  %v1872_v23 = vmov 1   ;;  %v1873_v24 = vmov 2   ;;  %v305_v27 = vsub.s32 0, %v1908_v2  ;;  %s267_s25 = sadd.s32 1, %s1868_s25   ;;  %s1868_s25 = sphi %s1956_s25, %s267_s25   ;;  %v1864_v17 = vphi %v1954_v17, %v2825_v17   ;;  %v1860_v16 = vphi %v1952_v16, %v2964_v16   ;;  %v1856_v11 = vphi %v256_v11, %v2963_v11   ;;  %v1852_v12 = vphi %v257_v12, %v2962_v12   ;;  %v1848_v3 = vphi %v237_v3, %v2961_v3   ;;  %v1844_v15 = vphi %v2955_v15, %v2960_v15   ;;  %v1840_v13 = vphi %v260_v13, %v2959_v13   ;;  %v1836_v14 = vphi %v261_v14, %v2958_v14  }
  0x18   : >> { %1769 = vset.pattern.permute.xlu1 %v1871_v18  ;;  %1768 = vset.pattern.permute.xlu0 %v1871_v18  ;;  %s277_s27 = scalar_lea.vmem %s1926_s20, %s1658_s26  ;;  %v309_v28 = vsub.s32 1, %v1908_v2  ;;  %v432_v31 = vstv %s1658_s26  ;;  %vm452_vm2 = vcmask 1040384   ;;  %p264_p5 = scmp.ge.s32.totalorder %s267_s25, 8  }
  0x19   : >> { %v280_v19 = vld [vmem:[%s277_s27 + $0x10] sm:$0xff]  ;;  %v278_v20 = vld [vmem:[%s277_s27] sm:$0xff]  ;;  %v281_v21 = vld [vmem:[%s277_s27 + $0x18] sm:$0xff]  ;;  %v306_v32 = vrot.slane %v1928_v7, %v305_v27  ;;  %v1992_v36 = vadd.s32 %v432_v31, %v1908_v2  ;;  %v1995_v37 = vadd.s32 %v432_v31, %v1918_v6  ;;  %v349_v38 = vrot.slane %v1936_v9, %v305_v27 }
  0x1a   : >> { %294 = vperm.xlu1 %1769, %v280_v19   ;;  %284 = vperm.xlu0 %1768, %v278_v20   ;;  %v279_v22 = vld [vmem:[%s277_s27 + $0x8] sm:$0xff]  ;;  %v310_v33 = vrot.slane %v1928_v7, %v309_v28  ;;  %v353_v39 = vrot.slane %v1936_v9, %v309_v28  ;;  %v2000_v44 = vadd.s32 %v432_v31, %v1912_v4 }
  0x1b   : >> { %v2003_v45 = vadd.s32 %v432_v31, %v1915_v5  ;;  %v400_v48 = vrot.slane %v1938_v10, %v305_v27  ;;  %v404_v49 = vrot.slane %v1938_v10, %v309_v28  ;;  %vm437_vm1 = vcmp.lt.s32.totalorder %v1992_v36, 64 }
  0x1c   : >> { %vm439_vm0 = vcmp.lt.s32.totalorder %v2000_v44, 64  ;;  %vm438_vm3 = vcmp.lt.s32.totalorder %v1995_v37, 64 }
  0x1d   : >> { %vm440_vm4 = vcmp.lt.s32.totalorder %v2003_v45, 64 }
  0x1e   : >> { %299 = vperm.xlu1 %1769, %v281_v21   ;;  %289 = vperm.xlu0 %1768, %v279_v22  }
  0x22   : >> { %1771 = vset.pattern.permute.xlu1 %v1872_v23  ;;  %1770 = vset.pattern.permute.xlu0 %v1872_v23 }
  0x23   : >> { %334 = vperm.xlu1 %1771, %v279_v22   ;;  %330 = vperm.xlu0 %1770, %v278_v20  }
  0x27   : >> { %338 = vperm.xlu1 %1771, %v280_v19   ;;  %342 = vperm.xlu0 %1770, %v281_v21  }
  0x2b   : >> { %1772 = vset.pattern.permute.xlu1 %v1873_v24  ;;  %1773 = vset.pattern.permute.xlu0 %v1873_v24 }
  0x2c   : >> { %381 = vperm.xlu1 %1772, %v278_v20   ;;  %385 = vperm.xlu0 %1773, %v279_v22  }
  0x30   : >> { %389 = vperm.xlu1 %1772, %v280_v19  }
  0x34   : >> { %393 = vperm.xlu1 %1772, %v281_v21  }
  0x99   : >> { %v295_v25 = vpop.permute.xlu1 %294  ;;  %v285_v26 = vpop.permute.xlu0 %284 }
  0x9a   : >> { %v317_v40 = vsub.f32 %v295_v25, %v306_v32  ;;  %v318_v41 = vsub.f32 %v295_v25, %v310_v33  ;;  %v313_v42 = vsub.f32 %v285_v26, %v306_v32  ;;  %v314_v43 = vsub.f32 %v285_v26, %v310_v33 }
  0x9c   : >> { %v325_v54 = vmul.f32 %v317_v40, %v317_v40  ;;  %v326_v55 = vmul.f32 %v318_v41, %v318_v41  ;;  %v321_v56 = vmul.f32 %v313_v42, %v313_v42  ;;  %v322_v57 = vmul.f32 %v314_v43, %v314_v43 }
  0x9d   : >> { %v300_v29 = vpop.permute.xlu1 %299  ;;  %v290_v30 = vpop.permute.xlu0 %289 }
  0x9e   : >> { %v319_v50 = vsub.f32 %v300_v29, %v306_v32  ;;  %v320_v51 = vsub.f32 %v300_v29, %v310_v33  ;;  %v315_v58 = vsub.f32 %v290_v30, %v306_v32  ;;  %v316_v59 = vsub.f32 %v290_v30, %v310_v33 }
  0xa0   : >> { %v327_v62 = vmul.f32 %v319_v50, %v319_v50  ;;  %v328_v63 = vmul.f32 %v320_v51, %v320_v51  ;;  %v323_v28 = vmul.f32 %v315_v58, %v315_v58  ;;  %v324_v29 = vmul.f32 %v316_v59, %v316_v59 }
  0xa2   : >> { %v335_v34 = vpop.permute.xlu1 %334  ;;  %v331_v35 = vpop.permute.xlu0 %330 }
  0xa3   : >> { %v356_v52 = vsub.f32 %v331_v35, %v349_v38  ;;  %v357_v53 = vsub.f32 %v331_v35, %v353_v39  ;;  %v358_v1 = vsub.f32 %v335_v34, %v349_v38  ;;  %v359_v8 = vsub.f32 %v335_v34, %v353_v39 }
  0xa5   : >> { %v364_v20 = vmul.f32 %v356_v52, %v356_v52  ;;  %v365_v21 = vmul.f32 %v357_v53, %v357_v53  ;;  %v366_v32 = vmul.f32 %v358_v1, %v358_v1  ;;  %v367_v33 = vmul.f32 %v359_v8, %v359_v8 }
  0xa6   : >> { %v339_v46 = vpop.permute.xlu1 %338  ;;  %v343_v47 = vpop.permute.xlu0 %342 }
  0xa7   : >> { %v360_v60 = vsub.f32 %v339_v46, %v349_v38  ;;  %v361_v61 = vsub.f32 %v339_v46, %v353_v39  ;;  %v362_v22 = vsub.f32 %v343_v47, %v349_v38  ;;  %v363_v23 = vsub.f32 %v343_v47, %v353_v39 }
  0xa8   : >> { %v372_v41 = vadd.f32 %v364_v20, %v321_v56  ;;  %v373_v42 = vadd.f32 %v365_v21, %v322_v57  ;;  %v374_v59 = vadd.f32 %v366_v32, %v323_v28  ;;  %v453_v28 = vsel %vm452_vm2, %v1856_v11, inf }
  0xa9   : >> { %v368_v30 = vmul.f32 %v360_v60, %v360_v60  ;;  %v369_v31 = vmul.f32 %v361_v61, %v361_v61  ;;  %v370_v43 = vmul.f32 %v362_v22, %v362_v22  ;;  %v371_v46 = vmul.f32 %v363_v23, %v363_v23 }
  0xaa   : >> { %v375_v60 = vadd.f32 %v367_v33, %v324_v29  ;;  %v465_v29 = vsel %vm452_vm2, %v1852_v12, inf }
  0xab   : >> { %v382_v18 = vpop.permute.xlu1 %381  ;;  %v386_v19 = vpop.permute.xlu0 %385  ;;  %v376_v51 = vadd.f32 %v368_v30, %v325_v54  ;;  %v377_v52 = vadd.f32 %v369_v31, %v326_v55  ;;  %v378_v57 = vadd.f32 %v370_v43, %v327_v62  ;;  %v379_v20 = vadd.f32 %v371_v46, %v328_v63 }
  0xac   : >> { %v407_v24 = vsub.f32 %v382_v18, %v400_v48  ;;  %v408_v25 = vsub.f32 %v382_v18, %v404_v49  ;;  %v409_v26 = vsub.f32 %v386_v19, %v400_v48  ;;  %v410_v27 = vsub.f32 %v386_v19, %v404_v49 }
  0xae   : >> { %v415_v34 = vmul.f32 %v407_v24, %v407_v24  ;;  %v416_v35 = vmul.f32 %v408_v25, %v408_v25  ;;  %v417_v47 = vmul.f32 %v409_v26, %v409_v26  ;;  %v418_v50 = vmul.f32 %v410_v27, %v410_v27 }
  0xaf   : >> { %v390_v40 = vpop.permute.xlu1 %389 }
  0xb0   : >> { %v411_v38 = vsub.f32 %v390_v40, %v400_v48  ;;  %v412_v39 = vsub.f32 %v390_v40, %v404_v49  ;;  %v423_v61 = vadd.f32 %v415_v34, %v372_v41  ;;  %v424_v1 = vadd.f32 %v416_v35, %v373_v42 }
  0xb1   : >> { %v425_v21 = vadd.f32 %v417_v47, %v374_v59  ;;  %v426_v22 = vadd.f32 %v418_v50, %v375_v60 }
  0xb2   : >> { %v419_v53 = vmul.f32 %v411_v38, %v411_v38  ;;  %v420_v58 = vmul.f32 %v412_v39, %v412_v39 }
  0xb3   : >> { %v394_v8 = vpop.permute.xlu1 %393  ;;  %v2035_v30 = vsel %vm438_vm3, %v425_v21, inf  ;;  %v2037_v31 = vsel %vm438_vm3, %v426_v22, inf }
  0xb4   : >> { %v427_v18 = vadd.f32 %v419_v53, %v376_v51  ;;  %v428_v19 = vadd.f32 %v420_v58, %v377_v52  ;;  %v413_v24 = vsub.f32 %v394_v8, %v400_v48  ;;  %v414_v56 = vsub.f32 %v394_v8, %v404_v49 }
  0xb5   : >> { %v2021_v48 = vsel %vm437_vm1, %v423_v61, inf  ;;  %v2025_v49 = vsel %vm437_vm1, %v424_v1, inf }
  0xb6   : >> { %v2011_v23 = vsel %vm439_vm0, %v427_v18, inf  ;;  %v2015_v54 = vsel %vm439_vm0, %v428_v19, inf  ;;  %v421_v55 = vmul.f32 %v413_v24, %v413_v24  ;;  %v422_v25 = vmul.f32 %v414_v56, %v414_v56 }
  0xb7   : >> { %v449_v26 = vmin.f32 %v2021_v48, %v2011_v23  ;;  %v462_v27 = vmin.f32 %v2025_v49, %v2015_v54 }
  0xb8   : >> { %v429_v62 = vadd.f32 %v421_v55, %v378_v57  ;;  %v430_v63 = vadd.f32 %v422_v25, %v379_v20 }
  0xb9   : >> { %v451_v40 = vmin.f32 %v449_v26, %v1864_v17  ;;  %v464_v41 = vmin.f32 %v462_v27, %v1860_v16 }
  0xba   : >> { %v2039_v32 = vsel %vm440_vm4, %v429_v62, inf  ;;  %v2041_v33 = vsel %vm440_vm4, %v430_v63, inf }
  0xbb   : >> { %v450_v34 = vmin.f32 %v2035_v30, %v2039_v32  ;;  %v463_v35 = vmin.f32 %v2037_v31, %v2041_v33 }
  0xbd   : >> { %v454_v42 = vmin.f32 %v450_v34, %v453_v28  ;;  %v466_v38 = vmin.f32 %v463_v35, %v465_v29 }
  0xbf   : >> { %v455_v39 = vmin.f32 %v451_v40, %v454_v42  ;;  %v467_v43 = vmin.f32 %v464_v41, %v466_v38 }
  0xc1   : >> { %v456_v46 = vrot.slane %v455_v39, 4  ;;  %v468_v47 = vrot.slane %v467_v43, 4 }
  0xc3   : >> { %v457_v50 = vmin.f32 %v455_v39, %v456_v46  ;;  %v469_v51 = vmin.f32 %v467_v43, %v468_v47 }
  0xc5   : >> { %v458_v52 = vrot.slane %v457_v50, 2  ;;  %v470_v53 = vrot.slane %v469_v51, 2 }
  0xc7   : >> { %v459_v58 = vmin.f32 %v457_v50, %v458_v52  ;;  %v471_v59 = vmin.f32 %v469_v51, %v470_v53 }
  0xc9   : >> { %v460_v60 = vrot.slane %v459_v58, 1  ;;  %v472_v61 = vrot.slane %v471_v59, 1 }
  0xcb   : >> { %v2049_v1 = vmin.f32 %v459_v58, %v460_v60  ;;  %v2051_v8 = vmin.f32 %v471_v59, %v472_v61 }
  0xcd   : >> { %vm474_vm5 = vcmp.le.f32.partialorder %v2021_v48, %v2049_v1  ;;  %vm475_vm6 = vcmp.le.f32.partialorder %v2025_v49, %v2051_v8  ;;  %vm476_vm7 = vcmp.le.f32.partialorder %v2035_v30, %v2049_v1  ;;  %vm477_vm8 = vcmp.le.f32.partialorder %v2037_v31, %v2051_v8 }
  0xce   : >> { %vm478_vm9 = vcmp.le.f32.partialorder %v2011_v23, %v2049_v1  ;;  %vm479_vm10 = vcmp.le.f32.partialorder %v2015_v54, %v2051_v8  ;;  %vm480_vm11 = vcmp.le.f32.partialorder %v2039_v32, %v2049_v1  ;;  %vm481_vm12 = vcmp.le.f32.partialorder %v2041_v33, %v2051_v8 }
  0xcf   : >> { %vm482_vm13 = vcmp.le.f32.partialorder %v1864_v17, %v2049_v1  ;;  %vm483_vm14 = vcmp.le.f32.partialorder %v1860_v16, %v2051_v8  ;;  %vm484_vm15 = vcmp.le.f32.partialorder %v1856_v11, %v2049_v1  ;;  %vm485_vm0 = vcmp.le.f32.partialorder %v1852_v12, %v2051_v8 }
  0xd0   : >> { %v486_v18 = vsel %vm474_vm5, %v1992_v36, 2147483647  ;;  %v487_v19 = vsel %vm475_vm6, %v1992_v36, 2147483647  ;;  %v488_v24 = vsel %vm476_vm7, %v1995_v37, 2147483647 }
  0xd1   : >> { %v489_v56 = vsel %vm477_vm8, %v1995_v37, 2147483647  ;;  %v490_v57 = vsel %vm478_vm9, %v2000_v44, 2147483647  ;;  %v491_v20 = vsel %vm479_vm10, %v2000_v44, 2147483647 }
  0xd2   : >> { %v492_v21 = vsel %vm480_vm11, %v2003_v45, 2147483647  ;;  %v493_v22 = vsel %vm481_vm12, %v2003_v45, 2147483647  ;;  %v494_v55 = vsel %vm482_vm13, %v1848_v3, 2147483647  ;;  %vm498_vm1 = vcmp.lt.s32.totalorder %v486_v18, %v490_v57 }
  0xd3   : >> { %v495_v25 = vsel %vm483_vm14, %v1844_v15, 2147483647  ;;  %v496_v62 = vsel %vm484_vm15, %v1840_v13, 2147483647  ;;  %v497_v63 = vsel %vm485_vm0, %v1836_v14, 2147483647  ;;  %v499_v26 = vsel %vm498_vm1, %v486_v18, %v490_v57 }
  0xd4   : >> { %vm500_vm3 = vcmp.lt.s32.totalorder %v488_v24, %v492_v21  ;;  %vm502_vm4 = vcmp.lt.s32.totalorder %v499_v26, %v494_v55  ;;  %v504_v27 = vsel %vm452_vm2, %v496_v62, 2147483647  ;;  %vm518_vm5 = vcmp.lt.s32.totalorder %v487_v19, %v491_v20 }
  0xd5   : >> { %v501_v28 = vsel %vm500_vm3, %v488_v24, %v492_v21  ;;  %v503_v29 = vsel %vm502_vm4, %v499_v26, %v494_v55  ;;  %v519_v34 = vsel %vm518_vm5, %v487_v19, %v491_v20  ;;  %vm520_vm6 = vcmp.lt.s32.totalorder %v489_v56, %v493_v22 }
  0xd6   : >> { %vm505_vm7 = vcmp.lt.s32.totalorder %v501_v28, %v504_v27  ;;  %v521_v35 = vsel %vm520_vm6, %v489_v56, %v493_v22  ;;  %vm522_vm8 = vcmp.lt.s32.totalorder %v519_v34, %v495_v25  ;;  %v524_v40 = vsel %vm452_vm2, %v497_v63, 2147483647 }
  0xd7   : >> { %v506_v41 = vsel %vm505_vm7, %v501_v28, %v504_v27  ;;  %v523_v42 = vsel %vm522_vm8, %v519_v34, %v495_v25  ;;  %vm525_vm9 = vcmp.lt.s32.totalorder %v521_v35, %v524_v40 }
  0xd8   : >> { %vm507_vm10 = vcmp.lt.s32.totalorder %v503_v29, %v506_v41  ;;  %v526_v38 = vsel %vm525_vm9, %v521_v35, %v524_v40 }
  0xd9   : >> { %v508_v39 = vsel %vm507_vm10, %v503_v29, %v506_v41  ;;  %vm527_vm11 = vcmp.lt.s32.totalorder %v523_v42, %v526_v38 }
  0xda   : >> { %v509_v43 = vrot.slane %v508_v39, 4  ;;  %v528_v46 = vsel %vm527_vm11, %v523_v42, %v526_v38 }
  0xdb   : >> { %v529_v47 = vrot.slane %v528_v46, 4 }
  0xdc   : >> { %vm510_vm12 = vcmp.lt.s32.totalorder %v508_v39, %v509_v43 }
  0xdd   : >> { %v511_v50 = vsel %vm510_vm12, %v508_v39, %v509_v43  ;;  %vm530_vm13 = vcmp.lt.s32.totalorder %v528_v46, %v529_v47 }
  0xde   : >> { %v512_v51 = vrot.slane %v511_v50, 2  ;;  %v531_v52 = vsel %vm530_vm13, %v528_v46, %v529_v47 }
  0xdf   : >> { %v532_v53 = vrot.slane %v531_v52, 2 }
  0xe0   : >> { %vm513_vm14 = vcmp.lt.s32.totalorder %v511_v50, %v512_v51 }
  0xe1   : >> { %v514_v58 = vsel %vm513_vm14, %v511_v50, %v512_v51  ;;  %vm533_vm15 = vcmp.lt.s32.totalorder %v531_v52, %v532_v53 }
  0xe2   : >> { %v515_v59 = vrot.slane %v514_v58, 1  ;;  %v534_v60 = vsel %vm533_vm15, %v531_v52, %v532_v53 }
  0xe3   : >> { %v535_v61 = vrot.slane %v534_v60, 1 }
  0xe4   : >> { %vm516_vm0 = vcmp.lt.s32.totalorder %v514_v58, %v515_v59 }
  0xe5   : >> { %v2091_v18 = vsel %vm516_vm0, %v514_v58, %v515_v59  ;;  %vm536_vm1 = vcmp.lt.s32.totalorder %v534_v60, %v535_v61 }
  0xe6   : >> { %v2093_v19 = vsel %vm536_vm1, %v534_v60, %v535_v61  ;;  %vm538_vm3 = vcmp.eq.s32.totalorder %v1992_v36, %v2091_v18  ;;  %vm540_vm4 = vcmp.eq.s32.totalorder %v1995_v37, %v2091_v18  ;;  %vm542_vm5 = vcmp.eq.s32.totalorder %v2000_v44, %v2091_v18 }
  0xe7   : >> { %vm539_vm6 = vcmp.eq.s32.totalorder %v1992_v36, %v2093_v19  ;;  %vm541_vm7 = vcmp.eq.s32.totalorder %v1995_v37, %v2093_v19  ;;  %vm543_vm8 = vcmp.eq.s32.totalorder %v2000_v44, %v2093_v19  ;;  %vm544_vm9 = vcmp.eq.s32.totalorder %v2003_v45, %v2091_v18 }
  0xe8   : >> { %vm545_vm10 = vcmp.eq.s32.totalorder %v2003_v45, %v2093_v19  ;;  %vm546_vm11 = vcmp.eq.s32.totalorder %v1848_v3, %v2091_v18  ;;  %vm548_vm12 = vcmp.eq.s32.totalorder %v1840_v13, %v2091_v18  ;;  %vm549_vm13 = vcmp.eq.s32.totalorder %v1836_v14, %v2093_v19 }
  0xe9   : >> { %v2118_v24 = vsel %vm538_vm3, inf, %v2021_v48  ;;  %v2121_v56 = vsel %vm539_vm6, inf, %v2025_v49  ;;  %v2124_v57 = vsel %vm540_vm4, inf, %v2035_v30  ;;  %v2127_v20 = vsel %vm541_vm7, inf, %v2037_v31 }
  0xea   : >> { %v2130_v21 = vsel %vm542_vm5, inf, %v2011_v23  ;;  %v2133_v22 = vsel %vm543_vm8, inf, %v2015_v54  ;;  %v2136_v55 = vsel %vm544_vm9, inf, %v2039_v32  ;;  %vm547_vm14 = vcmp.eq.s32.totalorder %v1844_v15, %v2093_v19 }
  0xeb   : >> { %v2141_v48 = vsel %vm545_vm10, inf, %v2041_v33  ;;  %v2144_v49 = vsel %vm548_vm12, inf, %v1856_v11  ;;  %v2147_v30 = vsel %vm549_vm13, inf, %v1852_v12  ;;  %v562_v23 = vmin.f32 %v2118_v24, %v2130_v21 }
  0xec   : >> { %v563_v54 = vmin.f32 %v2124_v57, %v2136_v55  ;;  %v565_v31 = vsel %vm452_vm2, %v2144_v49, inf  ;;  %v2159_v32 = vsel %vm546_vm11, inf, %v1864_v17  ;;  %v574_v11 = vmin.f32 %v2121_v56, %v2133_v22 }
  0xed   : >> { %v575_v12 = vmin.f32 %v2127_v20, %v2141_v48  ;;  %v577_v33 = vsel %vm452_vm2, %v2147_v30, inf  ;;  %v2168_v25 = vsel %vm547_vm14, inf, %v1860_v16  ;;  %v564_v62 = vmin.f32 %v562_v23, %v2159_v32 }
  0xee   : >> { %v566_v63 = vmin.f32 %v563_v54, %v565_v31  ;;  %v576_v26 = vmin.f32 %v574_v11, %v2168_v25 }
  0xef   : >> { %v578_v27 = vmin.f32 %v575_v12, %v577_v33 }
  0xf0   : >> { %v567_v17 = vmin.f32 %v564_v62, %v566_v63 }
  0xf1   : >> { %v579_v28 = vmin.f32 %v576_v26, %v578_v27 }
  0xf2   : >> { %v568_v29 = vrot.slane %v567_v17, 4 }
  0xf3   : >> { %v580_v34 = vrot.slane %v579_v28, 4 }
  0xf4   : >> { %v569_v35 = vmin.f32 %v567_v17, %v568_v29 }
  0xf5   : >> { %v581_v40 = vmin.f32 %v579_v28, %v580_v34 }
  0xf6   : >> { %v570_v41 = vrot.slane %v569_v35, 2 }
  0xf7   : >> { %v582_v42 = vrot.slane %v581_v40, 2 }
  0xf8   : >> { %v571_v38 = vmin.f32 %v569_v35, %v570_v41 }
  0xf9   : >> { %v583_v39 = vmin.f32 %v581_v40, %v582_v42 }
  0xfa   : >> { %v572_v43 = vrot.slane %v571_v38, 1 }
  0xfb   : >> { %v584_v46 = vrot.slane %v583_v39, 1 }
  0xfc   : >> { %v573_v16 = vmin.f32 %v571_v38, %v572_v43 }
  0xfd   : >> { %v585_v47 = vmin.f32 %v583_v39, %v584_v46 }
  0xfe   : >> { %vm586_vm15 = vcmp.le.f32.partialorder %v2118_v24, %v573_v16  ;;  %vm588_vm0 = vcmp.le.f32.partialorder %v2124_v57, %v573_v16  ;;  %vm590_vm1 = vcmp.le.f32.partialorder %v2130_v21, %v573_v16  ;;  %vm592_vm3 = vcmp.le.f32.partialorder %v2136_v55, %v573_v16 }
  0xff   : >> { %vm587_vm4 = vcmp.le.f32.partialorder %v2121_v56, %v585_v47  ;;  %vm589_vm5 = vcmp.le.f32.partialorder %v2127_v20, %v585_v47  ;;  %vm591_vm6 = vcmp.le.f32.partialorder %v2133_v22, %v585_v47  ;;  %vm593_vm7 = vcmp.le.f32.partialorder %v2141_v48, %v585_v47 }
 0x100   : >> { %vm594_vm8 = vcmp.le.f32.partialorder %v2159_v32, %v573_v16  ;;  %vm595_vm9 = vcmp.le.f32.partialorder %v2168_v25, %v585_v47  ;;  %vm596_vm10 = vcmp.le.f32.partialorder %v2144_v49, %v573_v16  ;;  %vm597_vm11 = vcmp.le.f32.partialorder %v2147_v30, %v585_v47 }
 0x101   : >> { %v598_v50 = vsel %vm586_vm15, %v1992_v36, 2147483647  ;;  %v599_v51 = vsel %vm587_vm4, %v1992_v36, 2147483647  ;;  %v600_v52 = vsel %vm588_vm0, %v1995_v37, 2147483647  ;;  %v2189_v53 = vsel %vm452_vm2, %v2049_v1, %v573_v16 }
 0x102   : >> { %v601_v58 = vsel %vm589_vm5, %v1995_v37, 2147483647  ;;  %v602_v59 = vsel %vm590_vm1, %v2000_v44, 2147483647  ;;  %v603_v60 = vsel %vm591_vm6, %v2000_v44, 2147483647  ;;  %v2196_v61 = vsel %vm452_vm2, %v2051_v8, %v585_v47 }
 0x103   : >> { %v604_v23 = vsel %vm592_vm3, %v2003_v45, 2147483647  ;;  %v605_v54 = vsel %vm593_vm7, %v2003_v45, 2147483647  ;;  %v606_v31 = vsel %vm594_vm8, %v1848_v3, 2147483647  ;;  %vm610_vm12 = vcmp.lt.s32.totalorder %v598_v50, %v602_v59 }
 0x104   : >> { %v607_v1 = vsel %vm595_vm9, %v1844_v15, 2147483647  ;;  %v608_v11 = vsel %vm596_vm10, %v1840_v13, 2147483647  ;;  %v609_v12 = vsel %vm597_vm11, %v1836_v14, 2147483647  ;;  %v611_v33 = vsel %vm610_vm12, %v598_v50, %v602_v59 }
 0x105   : >> { %vm612_vm13 = vcmp.lt.s32.totalorder %v600_v52, %v604_v23  ;;  %vm614_vm14 = vcmp.lt.s32.totalorder %v611_v33, %v606_v31  ;;  %v616_v8 = vsel %vm452_vm2, %v608_v11, 2147483647  ;;  %vm630_vm15 = vcmp.lt.s32.totalorder %v599_v51, %v603_v60 }
 0x106   : >> { %v613_v62 = vsel %vm612_vm13, %v600_v52, %v604_v23  ;;  %v615_v63 = vsel %vm614_vm14, %v611_v33, %v606_v31  ;;  %v631_v26 = vsel %vm630_vm15, %v599_v51, %v603_v60  ;;  %vm632_vm0 = vcmp.lt.s32.totalorder %v601_v58, %v605_v54 }
 0x107   : >> { %vm617_vm1 = vcmp.lt.s32.totalorder %v613_v62, %v616_v8  ;;  %v633_v27 = vsel %vm632_vm0, %v601_v58, %v605_v54  ;;  %vm634_vm3 = vcmp.lt.s32.totalorder %v631_v26, %v607_v1  ;;  %v636_v17 = vsel %vm452_vm2, %v609_v12, 2147483647 }
 0x108   : >> { %v618_v28 = vsel %vm617_vm1, %v613_v62, %v616_v8  ;;  %v635_v29 = vsel %vm634_vm3, %v631_v26, %v607_v1  ;;  %vm637_vm4 = vcmp.lt.s32.totalorder %v633_v27, %v636_v17 }
 0x109   : >> { %vm619_vm5 = vcmp.lt.s32.totalorder %v615_v63, %v618_v28  ;;  %v638_v34 = vsel %vm637_vm4, %v633_v27, %v636_v17 }
 0x10a   : >> { %v620_v35 = vsel %vm619_vm5, %v615_v63, %v618_v28  ;;  %vm639_vm6 = vcmp.lt.s32.totalorder %v635_v29, %v638_v34 }
 0x10b   : >> { %v621_v40 = vrot.slane %v620_v35, 4  ;;  %v640_v41 = vsel %vm639_vm6, %v635_v29, %v638_v34 }
 0x10c   : >> { %v641_v42 = vrot.slane %v640_v41, 4 }
 0x10d   : >> { %vm622_vm7 = vcmp.lt.s32.totalorder %v620_v35, %v621_v40 }
 0x10e   : >> { %v623_v38 = vsel %vm622_vm7, %v620_v35, %v621_v40  ;;  %vm642_vm8 = vcmp.lt.s32.totalorder %v640_v41, %v641_v42 }
 0x10f   : >> { %v624_v39 = vrot.slane %v623_v38, 2  ;;  %v643_v43 = vsel %vm642_vm8, %v640_v41, %v641_v42 }
 0x110   : >> { %v644_v46 = vrot.slane %v643_v43, 2 }
 0x111   : >> { %vm625_vm9 = vcmp.lt.s32.totalorder %v623_v38, %v624_v39 }
 0x112   : >> { %v626_v16 = vsel %vm625_vm9, %v623_v38, %v624_v39  ;;  %vm645_vm10 = vcmp.lt.s32.totalorder %v643_v43, %v644_v46 }
 0x113   : >> { %v627_v47 = vrot.slane %v626_v16, 1  ;;  %v646_v50 = vsel %vm645_vm10, %v643_v43, %v644_v46  ;;  %vm1436_vm10 = vcmask 1041408  }
 0x114   : >> { %v647_v51 = vrot.slane %v646_v50, 1 }
 0x115   : >> { %vm628_vm11 = vcmp.lt.s32.totalorder %v626_v16, %v627_v47 }
 0x116   : >> { %v629_v52 = vsel %vm628_vm11, %v626_v16, %v627_v47  ;;  %vm648_vm12 = vcmp.lt.s32.totalorder %v646_v50, %v647_v51 }
 0x117   : >> { %v649_v58 = vsel %vm648_vm12, %v646_v50, %v647_v51  ;;  %vm650_vm13 = vcmp.eq.s32.totalorder %v1992_v36, %v629_v52  ;;  %vm652_vm14 = vcmp.eq.s32.totalorder %v1995_v37, %v629_v52  ;;  %vm654_vm15 = vcmp.eq.s32.totalorder %v2000_v44, %v629_v52 }
 0x118   : >> { %vm651_vm0 = vcmp.eq.s32.totalorder %v1992_v36, %v649_v58  ;;  %vm653_vm1 = vcmp.eq.s32.totalorder %v1995_v37, %v649_v58  ;;  %vm655_vm3 = vcmp.eq.s32.totalorder %v2000_v44, %v649_v58  ;;  %vm656_vm4 = vcmp.eq.s32.totalorder %v2003_v45, %v629_v52 }
 0x119   : >> { %vm657_vm5 = vcmp.eq.s32.totalorder %v2003_v45, %v649_v58  ;;  %vm658_vm6 = vcmp.eq.s32.totalorder %v1848_v3, %v629_v52  ;;  %vm660_vm7 = vcmp.eq.s32.totalorder %v1840_v13, %v629_v52  ;;  %vm661_vm8 = vcmp.eq.s32.totalorder %v1836_v14, %v649_v58 }
 0x11a   : >> { %v2220_v59 = vsel %vm650_vm13, inf, %v2118_v24  ;;  %v2223_v60 = vsel %vm651_vm0, inf, %v2121_v56  ;;  %v2226_v23 = vsel %vm652_vm14, inf, %v2124_v57  ;;  %v2229_v54 = vsel %vm653_vm1, inf, %v2127_v20 }
 0x11b   : >> { %v2232_v31 = vsel %vm654_vm15, inf, %v2130_v21  ;;  %v2235_v1 = vsel %vm655_vm3, inf, %v2133_v22  ;;  %v2238_v11 = vsel %vm656_vm4, inf, %v2136_v55  ;;  %vm659_vm9 = vcmp.eq.s32.totalorder %v1844_v15, %v649_v58 }
 0x11c   : >> { %v2242_v24 = vsel %vm657_vm5, inf, %v2141_v48  ;;  %v2245_v56 = vsel %vm658_vm6, inf, %v2159_v32  ;;  %v2248_v57 = vsel %vm660_vm7, inf, %v2144_v49  ;;  %v2251_v20 = vsel %vm661_vm8, inf, %v2147_v30 }
 0x11d   : >> { %v674_v21 = vmin.f32 %v2220_v59, %v2232_v31  ;;  %v675_v22 = vmin.f32 %v2226_v23, %v2238_v11  ;;  %v677_v55 = vsel %vm452_vm2, %v2248_v57, inf  ;;  %v686_v48 = vmin.f32 %v2223_v60, %v2235_v1 }
 0x11e   : >> { %v687_v32 = vmin.f32 %v2229_v54, %v2242_v24  ;;  %v689_v49 = vsel %vm452_vm2, %v2251_v20, inf  ;;  %v2267_v30 = vsel %vm452_vm2, %v2091_v18, %v629_v52  ;;  %v2270_v12 = vsel %vm659_vm9, inf, %v2168_v25 }
 0x11f   : >> { %v676_v33 = vmin.f32 %v674_v21, %v2245_v56  ;;  %v678_v8 = vmin.f32 %v675_v22, %v677_v55  ;;  %v2275_v62 = vsel %vm452_vm2, %v2093_v19, %v649_v58  ;;  %v688_v63 = vmin.f32 %v686_v48, %v2270_v12 }
 0x120   : >> { %v690_v26 = vmin.f32 %v687_v32, %v689_v49 }
 0x121   : >> { %v679_v27 = vmin.f32 %v676_v33, %v678_v8 }
 0x122   : >> { %v691_v17 = vmin.f32 %v688_v63, %v690_v26 }
 0x123   : >> { %v680_v28 = vrot.slane %v679_v27, 4 }
 0x124   : >> { %v692_v29 = vrot.slane %v691_v17, 4 }
 0x125   : >> { %v681_v34 = vmin.f32 %v679_v27, %v680_v28 }
 0x126   : >> { %v693_v18 = vmin.f32 %v691_v17, %v692_v29 }
 0x127   : >> { %v682_v35 = vrot.slane %v681_v34, 2 }
 0x128   : >> { %v694_v40 = vrot.slane %v693_v18, 2 }
 0x129   : >> { %v683_v25 = vmin.f32 %v681_v34, %v682_v35 }
 0x12a   : >> { %v695_v41 = vmin.f32 %v693_v18, %v694_v40 }
 0x12b   : >> { %v684_v42 = vrot.slane %v683_v25, 1 }
 0x12c   : >> { %v696_v38 = vrot.slane %v695_v41, 1 }
 0x12d   : >> { %v685_v39 = vmin.f32 %v683_v25, %v684_v42 }
 0x12e   : >> { %v697_v43 = vmin.f32 %v695_v41, %v696_v38 }
 0x12f   : >> { %vm698_vm11 = vcmp.le.f32.partialorder %v2220_v59, %v685_v39  ;;  %vm700_vm12 = vcmp.le.f32.partialorder %v2226_v23, %v685_v39  ;;  %vm702_vm13 = vcmp.le.f32.partialorder %v2232_v31, %v685_v39  ;;  %vm704_vm14 = vcmp.le.f32.partialorder %v2238_v11, %v685_v39 }
 0x130   : >> { %vm699_vm15 = vcmp.le.f32.partialorder %v2223_v60, %v697_v43  ;;  %vm701_vm0 = vcmp.le.f32.partialorder %v2229_v54, %v697_v43  ;;  %vm703_vm1 = vcmp.le.f32.partialorder %v2235_v1, %v697_v43  ;;  %vm705_vm3 = vcmp.le.f32.partialorder %v2242_v24, %v697_v43 }
 0x131   : >> { %vm706_vm4 = vcmp.le.f32.partialorder %v2245_v56, %v685_v39  ;;  %vm707_vm5 = vcmp.le.f32.partialorder %v2270_v12, %v697_v43  ;;  %vm708_vm6 = vcmp.le.f32.partialorder %v2248_v57, %v685_v39  ;;  %vm709_vm7 = vcmp.le.f32.partialorder %v2251_v20, %v697_v43 }
 0x132   : >> { %v710_v19 = vsel %vm698_vm11, %v1992_v36, 2147483647  ;;  %v711_v46 = vsel %vm699_vm15, %v1992_v36, 2147483647  ;;  %v712_v16 = vsel %vm700_vm12, %v1995_v37, 2147483647  ;;  %v2295_v47 = vsel %vm1436_vm10, %v2189_v53, %v685_v39 }
 0x133   : >> { %v713_v50 = vsel %vm701_vm0, %v1995_v37, 2147483647  ;;  %v714_v51 = vsel %vm702_vm13, %v2000_v44, 2147483647  ;;  %v715_v52 = vsel %vm703_vm1, %v2000_v44, 2147483647  ;;  %v2302_v58 = vsel %vm1436_vm10, %v2196_v61, %v697_v43 }
 0x134   : >> { %v716_v21 = vsel %vm704_vm14, %v2003_v45, 2147483647  ;;  %v717_v22 = vsel %vm705_vm3, %v2003_v45, 2147483647  ;;  %v718_v55 = vsel %vm706_vm4, %v1848_v3, 2147483647  ;;  %vm722_vm8 = vcmp.lt.s32.totalorder %v710_v19, %v714_v51 }
 0x135   : >> { %v719_v53 = vsel %vm707_vm5, %v1844_v15, 2147483647  ;;  %v720_v48 = vsel %vm708_vm6, %v1840_v13, 2147483647  ;;  %v721_v32 = vsel %vm709_vm7, %v1836_v14, 2147483647  ;;  %v723_v49 = vsel %vm722_vm8, %v710_v19, %v714_v51 }
 0x136   : >> { %vm724_vm9 = vcmp.lt.s32.totalorder %v712_v16, %v716_v21  ;;  %vm726_vm11 = vcmp.lt.s32.totalorder %v723_v49, %v718_v55  ;;  %v728_v61 = vsel %vm452_vm2, %v720_v48, 2147483647  ;;  %vm742_vm12 = vcmp.lt.s32.totalorder %v711_v46, %v715_v52 }
 0x137   : >> { %v725_v33 = vsel %vm724_vm9, %v712_v16, %v716_v21  ;;  %v727_v8 = vsel %vm726_vm11, %v723_v49, %v718_v55  ;;  %v743_v63 = vsel %vm742_vm12, %v711_v46, %v715_v52  ;;  %vm744_vm13 = vcmp.lt.s32.totalorder %v713_v50, %v717_v22 }
 0x138   : >> { %vm729_vm14 = vcmp.lt.s32.totalorder %v725_v33, %v728_v61  ;;  %v745_v26 = vsel %vm744_vm13, %v713_v50, %v717_v22  ;;  %vm746_vm15 = vcmp.lt.s32.totalorder %v743_v63, %v719_v53  ;;  %v748_v27 = vsel %vm452_vm2, %v721_v32, 2147483647 }
 0x139   : >> { %v730_v17 = vsel %vm729_vm14, %v725_v33, %v728_v61  ;;  %v747_v28 = vsel %vm746_vm15, %v743_v63, %v719_v53  ;;  %vm749_vm0 = vcmp.lt.s32.totalorder %v745_v26, %v748_v27 }
 0x13a   : >> { %vm731_vm1 = vcmp.lt.s32.totalorder %v727_v8, %v730_v17  ;;  %v750_v29 = vsel %vm749_vm0, %v745_v26, %v748_v27 }
 0x13b   : >> { %v732_v34 = vsel %vm731_vm1, %v727_v8, %v730_v17  ;;  %vm751_vm3 = vcmp.lt.s32.totalorder %v747_v28, %v750_v29 }
 0x13c   : >> { %v733_v18 = vrot.slane %v732_v34, 4  ;;  %v752_v35 = vsel %vm751_vm3, %v747_v28, %v750_v29 }
 0x13d   : >> { %v753_v40 = vrot.slane %v752_v35, 4 }
 0x13e   : >> { %vm734_vm4 = vcmp.lt.s32.totalorder %v732_v34, %v733_v18 }
 0x13f   : >> { %v735_v25 = vsel %vm734_vm4, %v732_v34, %v733_v18  ;;  %vm754_vm5 = vcmp.lt.s32.totalorder %v752_v35, %v753_v40 }
 0x140   : >> { %v736_v41 = vrot.slane %v735_v25, 2  ;;  %v755_v42 = vsel %vm754_vm5, %v752_v35, %v753_v40 }
 0x141   : >> { %v756_v38 = vrot.slane %v755_v42, 2 }
 0x142   : >> { %vm737_vm6 = vcmp.lt.s32.totalorder %v735_v25, %v736_v41 }
 0x143   : >> { %v738_v39 = vsel %vm737_vm6, %v735_v25, %v736_v41  ;;  %vm757_vm7 = vcmp.lt.s32.totalorder %v755_v42, %v756_v38 }
 0x144   : >> { %v739_v43 = vrot.slane %v738_v39, 1  ;;  %v758_v19 = vsel %vm757_vm7, %v755_v42, %v756_v38 }
 0x145   : >> { %v759_v46 = vrot.slane %v758_v19, 1 }
 0x146   : >> { %vm740_vm8 = vcmp.lt.s32.totalorder %v738_v39, %v739_v43 }
 0x147   : >> { %v741_v16 = vsel %vm740_vm8, %v738_v39, %v739_v43  ;;  %vm760_vm9 = vcmp.lt.s32.totalorder %v758_v19, %v759_v46  ;;  %vm1439_vm8 = vcmask 1042432  }
 0x148   : >> { %v761_v50 = vsel %vm760_vm9, %v758_v19, %v759_v46  ;;  %vm762_vm11 = vcmp.eq.s32.totalorder %v1992_v36, %v741_v16  ;;  %vm764_vm12 = vcmp.eq.s32.totalorder %v1995_v37, %v741_v16  ;;  %vm766_vm13 = vcmp.eq.s32.totalorder %v2000_v44, %v741_v16 }
 0x149   : >> { %vm763_vm14 = vcmp.eq.s32.totalorder %v1992_v36, %v761_v50  ;;  %vm765_vm15 = vcmp.eq.s32.totalorder %v1995_v37, %v761_v50  ;;  %vm767_vm0 = vcmp.eq.s32.totalorder %v2000_v44, %v761_v50  ;;  %vm768_vm1 = vcmp.eq.s32.totalorder %v2003_v45, %v741_v16 }
 0x14a   : >> { %vm769_vm3 = vcmp.eq.s32.totalorder %v2003_v45, %v761_v50  ;;  %vm770_vm4 = vcmp.eq.s32.totalorder %v1848_v3, %v741_v16  ;;  %vm772_vm5 = vcmp.eq.s32.totalorder %v1840_v13, %v741_v16  ;;  %vm773_vm6 = vcmp.eq.s32.totalorder %v1836_v14, %v761_v50 }
 0x14b   : >> { %v2326_v51 = vsel %vm762_vm11, inf, %v2220_v59  ;;  %v2329_v52 = vsel %vm763_vm14, inf, %v2223_v60  ;;  %v2332_v21 = vsel %vm764_vm12, inf, %v2226_v23  ;;  %v2335_v22 = vsel %vm765_vm15, inf, %v2229_v54 }
 0x14c   : >> { %v2338_v55 = vsel %vm766_vm13, inf, %v2232_v31  ;;  %v2341_v53 = vsel %vm767_vm0, inf, %v2235_v1  ;;  %v2344_v48 = vsel %vm768_vm1, inf, %v2238_v11  ;;  %vm771_vm7 = vcmp.eq.s32.totalorder %v1844_v15, %v761_v50 }
 0x14d   : >> { %v2348_v59 = vsel %vm769_vm3, inf, %v2242_v24  ;;  %v2351_v60 = vsel %vm770_vm4, inf, %v2245_v56  ;;  %v2354_v23 = vsel %vm772_vm5, inf, %v2248_v57  ;;  %v2357_v54 = vsel %vm773_vm6, inf, %v2251_v20 }
 0x14e   : >> { %v786_v31 = vmin.f32 %v2326_v51, %v2338_v55  ;;  %v787_v1 = vmin.f32 %v2332_v21, %v2344_v48  ;;  %v789_v11 = vsel %vm452_vm2, %v2354_v23, inf  ;;  %v798_v24 = vmin.f32 %v2329_v52, %v2341_v53 }
 0x14f   : >> { %v799_v56 = vmin.f32 %v2335_v22, %v2348_v59  ;;  %v801_v57 = vsel %vm452_vm2, %v2357_v54, inf  ;;  %v2373_v20 = vsel %vm1436_vm10, %v2267_v30, %v741_v16  ;;  %v2376_v32 = vsel %vm771_vm7, inf, %v2270_v12 }
 0x150   : >> { %v788_v49 = vmin.f32 %v786_v31, %v2351_v60  ;;  %v790_v61 = vmin.f32 %v787_v1, %v789_v11  ;;  %v2381_v33 = vsel %vm1436_vm10, %v2275_v62, %v761_v50  ;;  %v800_v8 = vmin.f32 %v798_v24, %v2376_v32 }
 0x151   : >> { %v802_v63 = vmin.f32 %v799_v56, %v801_v57 }
 0x152   : >> { %v791_v26 = vmin.f32 %v788_v49, %v790_v61 }
 0x153   : >> { %v803_v27 = vmin.f32 %v800_v8, %v802_v63 }
 0x154   : >> { %v792_v17 = vrot.slane %v791_v26, 4 }
 0x155   : >> { %v804_v28 = vrot.slane %v803_v27, 4 }
 0x156   : >> { %v793_v29 = vmin.f32 %v791_v26, %v792_v17 }
 0x157   : >> { %v805_v30 = vmin.f32 %v803_v27, %v804_v28 }
 0x158   : >> { %v794_v34 = vrot.slane %v793_v29, 2 }
 0x159   : >> { %v806_v18 = vrot.slane %v805_v30, 2 }
 0x15a   : >> { %v795_v12 = vmin.f32 %v793_v29, %v794_v34 }
 0x15b   : >> { %v807_v35 = vmin.f32 %v805_v30, %v806_v18 }
 0x15c   : >> { %v796_v40 = vrot.slane %v795_v12, 1 }
 0x15d   : >> { %v808_v25 = vrot.slane %v807_v35, 1 }
 0x15e   : >> { %v797_v41 = vmin.f32 %v795_v12, %v796_v40 }
 0x15f   : >> { %v809_v42 = vmin.f32 %v807_v35, %v808_v25 }
 0x160   : >> { %vm810_vm10 = vcmp.le.f32.partialorder %v2326_v51, %v797_v41  ;;  %vm812_vm9 = vcmp.le.f32.partialorder %v2332_v21, %v797_v41  ;;  %vm814_vm11 = vcmp.le.f32.partialorder %v2338_v55, %v797_v41  ;;  %vm816_vm12 = vcmp.le.f32.partialorder %v2344_v48, %v797_v41 }
 0x161   : >> { %vm811_vm13 = vcmp.le.f32.partialorder %v2329_v52, %v809_v42  ;;  %vm813_vm14 = vcmp.le.f32.partialorder %v2335_v22, %v809_v42  ;;  %vm815_vm15 = vcmp.le.f32.partialorder %v2341_v53, %v809_v42  ;;  %vm817_vm0 = vcmp.le.f32.partialorder %v2348_v59, %v809_v42 }
 0x162   : >> { %vm818_vm1 = vcmp.le.f32.partialorder %v2351_v60, %v797_v41  ;;  %vm819_vm3 = vcmp.le.f32.partialorder %v2376_v32, %v809_v42  ;;  %vm820_vm4 = vcmp.le.f32.partialorder %v2354_v23, %v797_v41  ;;  %vm821_vm5 = vcmp.le.f32.partialorder %v2357_v54, %v809_v42 }
 0x163   : >> { %v822_v62 = vsel %vm810_vm10, %v1992_v36, 2147483647  ;;  %v823_v38 = vsel %vm811_vm13, %v1992_v36, 2147483647  ;;  %v824_v39 = vsel %vm812_vm9, %v1995_v37, 2147483647  ;;  %v2401_v43 = vsel %vm1439_vm8, %v2295_v47, %v797_v41 }
 0x164   : >> { %v825_v19 = vsel %vm813_vm14, %v1995_v37, 2147483647  ;;  %v826_v46 = vsel %vm814_vm11, %v2000_v44, 2147483647  ;;  %v827_v16 = vsel %vm815_vm15, %v2000_v44, 2147483647  ;;  %v2408_v50 = vsel %vm1439_vm8, %v2302_v58, %v809_v42 }
 0x165   : >> { %v828_v31 = vsel %vm816_vm12, %v2003_v45, 2147483647  ;;  %v829_v1 = vsel %vm817_vm0, %v2003_v45, 2147483647  ;;  %v830_v11 = vsel %vm818_vm1, %v1848_v3, 2147483647  ;;  %vm834_vm6 = vcmp.lt.s32.totalorder %v822_v62, %v826_v46 }
 0x166   : >> { %v831_v47 = vsel %vm819_vm3, %v1844_v15, 2147483647  ;;  %v832_v24 = vsel %vm820_vm4, %v1840_v13, 2147483647  ;;  %v833_v56 = vsel %vm821_vm5, %v1836_v14, 2147483647  ;;  %v835_v57 = vsel %vm834_vm6, %v822_v62, %v826_v46 }
 0x167   : >> { %vm836_vm7 = vcmp.lt.s32.totalorder %v824_v39, %v828_v31  ;;  %vm838_vm10 = vcmp.lt.s32.totalorder %v835_v57, %v830_v11  ;;  %v840_v58 = vsel %vm452_vm2, %v832_v24, 2147483647  ;;  %vm854_vm9 = vcmp.lt.s32.totalorder %v823_v38, %v827_v16 }
 0x168   : >> { %v837_v49 = vsel %vm836_vm7, %v824_v39, %v828_v31  ;;  %v839_v61 = vsel %vm838_vm10, %v835_v57, %v830_v11  ;;  %v855_v8 = vsel %vm854_vm9, %v823_v38, %v827_v16  ;;  %vm856_vm11 = vcmp.lt.s32.totalorder %v825_v19, %v829_v1 }
 0x169   : >> { %vm841_vm12 = vcmp.lt.s32.totalorder %v837_v49, %v840_v58  ;;  %v857_v63 = vsel %vm856_vm11, %v825_v19, %v829_v1  ;;  %vm858_vm13 = vcmp.lt.s32.totalorder %v855_v8, %v831_v47  ;;  %v860_v26 = vsel %vm452_vm2, %v833_v56, 2147483647 }
 0x16a   : >> { %v842_v27 = vsel %vm841_vm12, %v837_v49, %v840_v58  ;;  %v859_v17 = vsel %vm858_vm13, %v855_v8, %v831_v47  ;;  %vm861_vm14 = vcmp.lt.s32.totalorder %v857_v63, %v860_v26 }
 0x16b   : >> { %vm843_vm15 = vcmp.lt.s32.totalorder %v839_v61, %v842_v27  ;;  %v862_v28 = vsel %vm861_vm14, %v857_v63, %v860_v26 }
 0x16c   : >> { %v844_v29 = vsel %vm843_vm15, %v839_v61, %v842_v27  ;;  %vm863_vm0 = vcmp.lt.s32.totalorder %v859_v17, %v862_v28 }
 0x16d   : >> { %v845_v30 = vrot.slane %v844_v29, 4  ;;  %v864_v34 = vsel %vm863_vm0, %v859_v17, %v862_v28 }
 0x16e   : >> { %v865_v18 = vrot.slane %v864_v34, 4 }
 0x16f   : >> { %vm846_vm1 = vcmp.lt.s32.totalorder %v844_v29, %v845_v30 }
 0x170   : >> { %v847_v12 = vsel %vm846_vm1, %v844_v29, %v845_v30  ;;  %vm866_vm3 = vcmp.lt.s32.totalorder %v864_v34, %v865_v18 }
 0x171   : >> { %v848_v35 = vrot.slane %v847_v12, 2  ;;  %v867_v40 = vsel %vm866_vm3, %v864_v34, %v865_v18 }
 0x172   : >> { %v868_v25 = vrot.slane %v867_v40, 2 }
 0x173   : >> { %vm849_vm4 = vcmp.lt.s32.totalorder %v847_v12, %v848_v35 }
 0x174   : >> { %v850_v41 = vsel %vm849_vm4, %v847_v12, %v848_v35  ;;  %vm869_vm5 = vcmp.lt.s32.totalorder %v867_v40, %v868_v25 }
 0x175   : >> { %v851_v42 = vrot.slane %v850_v41, 1  ;;  %v870_v62 = vsel %vm869_vm5, %v867_v40, %v868_v25 }
 0x176   : >> { %v871_v38 = vrot.slane %v870_v62, 1 }
 0x177   : >> { %vm852_vm6 = vcmp.lt.s32.totalorder %v850_v41, %v851_v42 }
 0x178   : >> { %v853_v39 = vsel %vm852_vm6, %v850_v41, %v851_v42  ;;  %vm872_vm7 = vcmp.lt.s32.totalorder %v870_v62, %v871_v38  ;;  %vm1442_vm6 = vcmask 1043456  }
 0x179   : >> { %v873_v19 = vsel %vm872_vm7, %v870_v62, %v871_v38  ;;  %vm874_vm10 = vcmp.eq.s32.totalorder %v1992_v36, %v853_v39  ;;  %vm876_vm9 = vcmp.eq.s32.totalorder %v1995_v37, %v853_v39  ;;  %vm878_vm11 = vcmp.eq.s32.totalorder %v2000_v44, %v853_v39 }
 0x17a   : >> { %vm875_vm12 = vcmp.eq.s32.totalorder %v1992_v36, %v873_v19  ;;  %vm877_vm13 = vcmp.eq.s32.totalorder %v1995_v37, %v873_v19  ;;  %vm879_vm14 = vcmp.eq.s32.totalorder %v2000_v44, %v873_v19  ;;  %vm880_vm15 = vcmp.eq.s32.totalorder %v2003_v45, %v853_v39 }
 0x17b   : >> { %vm881_vm0 = vcmp.eq.s32.totalorder %v2003_v45, %v873_v19  ;;  %vm882_vm1 = vcmp.eq.s32.totalorder %v1848_v3, %v853_v39  ;;  %vm884_vm3 = vcmp.eq.s32.totalorder %v1840_v13, %v853_v39  ;;  %vm885_vm4 = vcmp.eq.s32.totalorder %v1836_v14, %v873_v19 }
 0x17c   : >> { %v2432_v46 = vsel %vm874_vm10, inf, %v2326_v51  ;;  %v2435_v16 = vsel %vm875_vm12, inf, %v2329_v52  ;;  %v2438_v31 = vsel %vm876_vm9, inf, %v2332_v21  ;;  %v2441_v1 = vsel %vm877_vm13, inf, %v2335_v22 }
 0x17d   : >> { %v2444_v11 = vsel %vm878_vm11, inf, %v2338_v55  ;;  %v2447_v47 = vsel %vm879_vm14, inf, %v2341_v53  ;;  %v2450_v24 = vsel %vm880_vm15, inf, %v2344_v48  ;;  %vm883_vm5 = vcmp.eq.s32.totalorder %v1844_v15, %v873_v19 }
 0x17e   : >> { %v2454_v51 = vsel %vm881_vm0, inf, %v2348_v59  ;;  %v2457_v52 = vsel %vm882_vm1, inf, %v2351_v60  ;;  %v2460_v21 = vsel %vm884_vm3, inf, %v2354_v23  ;;  %v2463_v22 = vsel %vm885_vm4, inf, %v2357_v54 }
 0x17f   : >> { %v898_v55 = vmin.f32 %v2432_v46, %v2444_v11  ;;  %v899_v53 = vmin.f32 %v2438_v31, %v2450_v24  ;;  %v901_v48 = vsel %vm452_vm2, %v2460_v21, inf  ;;  %v910_v59 = vmin.f32 %v2435_v16, %v2447_v47 }
 0x180   : >> { %v911_v60 = vmin.f32 %v2441_v1, %v2454_v51  ;;  %v913_v23 = vsel %vm452_vm2, %v2463_v22, inf  ;;  %v2479_v54 = vsel %vm1439_vm8, %v2373_v20, %v853_v39  ;;  %v2482_v56 = vsel %vm883_vm5, inf, %v2376_v32 }
 0x181   : >> { %v900_v57 = vmin.f32 %v898_v55, %v2457_v52  ;;  %v902_v58 = vmin.f32 %v899_v53, %v901_v48  ;;  %v2487_v49 = vsel %vm1439_vm8, %v2381_v33, %v873_v19  ;;  %v912_v61 = vmin.f32 %v910_v59, %v2482_v56 }
 0x182   : >> { %v914_v8 = vmin.f32 %v911_v60, %v913_v23 }
 0x183   : >> { %v903_v63 = vmin.f32 %v900_v57, %v902_v58 }
 0x184   : >> { %v915_v26 = vmin.f32 %v912_v61, %v914_v8 }
 0x185   : >> { %v904_v27 = vrot.slane %v903_v63, 4 }
 0x186   : >> { %v916_v17 = vrot.slane %v915_v26, 4 }
 0x187   : >> { %v905_v28 = vmin.f32 %v903_v63, %v904_v27 }
 0x188   : >> { %v917_v20 = vmin.f32 %v915_v26, %v916_v17 }
 0x189   : >> { %v906_v29 = vrot.slane %v905_v28, 2 }
 0x18a   : >> { %v918_v30 = vrot.slane %v917_v20, 2 }
 0x18b   : >> { %v907_v32 = vmin.f32 %v905_v28, %v906_v29 }
 0x18c   : >> { %v919_v34 = vmin.f32 %v917_v20, %v918_v30 }
 0x18d   : >> { %v908_v18 = vrot.slane %v907_v32, 1 }
 0x18e   : >> { %v920_v12 = vrot.slane %v919_v34, 1 }
 0x18f   : >> { %v909_v35 = vmin.f32 %v907_v32, %v908_v18 }
 0x190   : >> { %v921_v40 = vmin.f32 %v919_v34, %v920_v12 }
 0x191   : >> { %vm922_vm8 = vcmp.le.f32.partialorder %v2432_v46, %v909_v35  ;;  %vm924_vm7 = vcmp.le.f32.partialorder %v2438_v31, %v909_v35  ;;  %vm926_vm10 = vcmp.le.f32.partialorder %v2444_v11, %v909_v35  ;;  %vm928_vm9 = vcmp.le.f32.partialorder %v2450_v24, %v909_v35 }
 0x192   : >> { %vm923_vm11 = vcmp.le.f32.partialorder %v2435_v16, %v921_v40  ;;  %vm925_vm12 = vcmp.le.f32.partialorder %v2441_v1, %v921_v40  ;;  %vm927_vm13 = vcmp.le.f32.partialorder %v2447_v47, %v921_v40  ;;  %vm929_vm14 = vcmp.le.f32.partialorder %v2454_v51, %v921_v40 }
 0x193   : >> { %vm930_vm15 = vcmp.le.f32.partialorder %v2457_v52, %v909_v35  ;;  %vm931_vm0 = vcmp.le.f32.partialorder %v2482_v56, %v921_v40  ;;  %vm932_vm1 = vcmp.le.f32.partialorder %v2460_v21, %v909_v35  ;;  %vm933_vm3 = vcmp.le.f32.partialorder %v2463_v22, %v921_v40 }
 0x194   : >> { %v934_v33 = vsel %vm922_vm8, %v1992_v36, 2147483647  ;;  %v935_v25 = vsel %vm923_vm11, %v1992_v36, 2147483647  ;;  %v936_v41 = vsel %vm924_vm7, %v1995_v37, 2147483647  ;;  %v2507_v42 = vsel %vm1442_vm6, %v2401_v43, %v909_v35 }
 0x195   : >> { %v937_v62 = vsel %vm925_vm12, %v1995_v37, 2147483647  ;;  %v938_v38 = vsel %vm926_vm10, %v2000_v44, 2147483647  ;;  %v939_v39 = vsel %vm927_vm13, %v2000_v44, 2147483647  ;;  %v2514_v19 = vsel %vm1442_vm6, %v2408_v50, %v921_v40 }
 0x196   : >> { %v940_v55 = vsel %vm928_vm9, %v2003_v45, 2147483647  ;;  %v941_v53 = vsel %vm929_vm14, %v2003_v45, 2147483647  ;;  %v942_v48 = vsel %vm930_vm15, %v1848_v3, 2147483647  ;;  %vm946_vm4 = vcmp.lt.s32.totalorder %v934_v33, %v938_v38 }
 0x197   : >> { %v943_v43 = vsel %vm931_vm0, %v1844_v15, 2147483647  ;;  %v944_v59 = vsel %vm932_vm1, %v1840_v13, 2147483647  ;;  %v945_v60 = vsel %vm933_vm3, %v1836_v14, 2147483647  ;;  %v947_v23 = vsel %vm946_vm4, %v934_v33, %v938_v38 }
 0x198   : >> { %vm948_vm5 = vcmp.lt.s32.totalorder %v936_v41, %v940_v55  ;;  %vm950_vm8 = vcmp.lt.s32.totalorder %v947_v23, %v942_v48  ;;  %v952_v50 = vsel %vm452_vm2, %v944_v59, 2147483647  ;;  %vm966_vm7 = vcmp.lt.s32.totalorder %v935_v25, %v939_v39 }
 0x199   : >> { %v949_v57 = vsel %vm948_vm5, %v936_v41, %v940_v55  ;;  %v951_v58 = vsel %vm950_vm8, %v947_v23, %v942_v48  ;;  %v967_v61 = vsel %vm966_vm7, %v935_v25, %v939_v39  ;;  %vm968_vm10 = vcmp.lt.s32.totalorder %v937_v62, %v941_v53 }
 0x19a   : >> { %vm953_vm9 = vcmp.lt.s32.totalorder %v949_v57, %v952_v50  ;;  %v969_v8 = vsel %vm968_vm10, %v937_v62, %v941_v53  ;;  %vm970_vm11 = vcmp.lt.s32.totalorder %v967_v61, %v943_v43  ;;  %v972_v63 = vsel %vm452_vm2, %v945_v60, 2147483647 }
 0x19b   : >> { %v954_v26 = vsel %vm953_vm9, %v949_v57, %v952_v50  ;;  %v971_v27 = vsel %vm970_vm11, %v967_v61, %v943_v43  ;;  %vm973_vm12 = vcmp.lt.s32.totalorder %v969_v8, %v972_v63 }
 0x19c   : >> { %vm955_vm13 = vcmp.lt.s32.totalorder %v951_v58, %v954_v26  ;;  %v974_v17 = vsel %vm973_vm12, %v969_v8, %v972_v63 }
 0x19d   : >> { %v956_v28 = vsel %vm955_vm13, %v951_v58, %v954_v26  ;;  %vm975_vm14 = vcmp.lt.s32.totalorder %v971_v27, %v974_v17 }
 0x19e   : >> { %v957_v20 = vrot.slane %v956_v28, 4  ;;  %v976_v29 = vsel %vm975_vm14, %v971_v27, %v974_v17 }
 0x19f   : >> { %v977_v30 = vrot.slane %v976_v29, 4 }
 0x1a0   : >> { %vm958_vm15 = vcmp.lt.s32.totalorder %v956_v28, %v957_v20 }
 0x1a1   : >> { %v959_v32 = vsel %vm958_vm15, %v956_v28, %v957_v20  ;;  %vm978_vm0 = vcmp.lt.s32.totalorder %v976_v29, %v977_v30 }
 0x1a2   : >> { %v960_v34 = vrot.slane %v959_v32, 2  ;;  %v979_v18 = vsel %vm978_vm0, %v976_v29, %v977_v30 }
 0x1a3   : >> { %v980_v12 = vrot.slane %v979_v18, 2 }
 0x1a4   : >> { %vm961_vm1 = vcmp.lt.s32.totalorder %v959_v32, %v960_v34 }
 0x1a5   : >> { %v962_v35 = vsel %vm961_vm1, %v959_v32, %v960_v34  ;;  %vm981_vm3 = vcmp.lt.s32.totalorder %v979_v18, %v980_v12 }
 0x1a6   : >> { %v963_v40 = vrot.slane %v962_v35, 1  ;;  %v982_v33 = vsel %vm981_vm3, %v979_v18, %v980_v12 }
 0x1a7   : >> { %v983_v25 = vrot.slane %v982_v33, 1 }
 0x1a8   : >> { %vm964_vm4 = vcmp.lt.s32.totalorder %v962_v35, %v963_v40 }
 0x1a9   : >> { %v965_v41 = vsel %vm964_vm4, %v962_v35, %v963_v40  ;;  %vm984_vm5 = vcmp.lt.s32.totalorder %v982_v33, %v983_v25  ;;  %vm1445_vm4 = vcmask 1044480  }
 0x1aa   : >> { %v985_v62 = vsel %vm984_vm5, %v982_v33, %v983_v25  ;;  %vm986_vm8 = vcmp.eq.s32.totalorder %v1992_v36, %v965_v41  ;;  %vm988_vm7 = vcmp.eq.s32.totalorder %v1995_v37, %v965_v41  ;;  %vm990_vm10 = vcmp.eq.s32.totalorder %v2000_v44, %v965_v41 }
 0x1ab   : >> { %vm987_vm9 = vcmp.eq.s32.totalorder %v1992_v36, %v985_v62  ;;  %vm989_vm11 = vcmp.eq.s32.totalorder %v1995_v37, %v985_v62  ;;  %vm991_vm12 = vcmp.eq.s32.totalorder %v2000_v44, %v985_v62  ;;  %vm992_vm13 = vcmp.eq.s32.totalorder %v2003_v45, %v965_v41 }
 0x1ac   : >> { %vm993_vm14 = vcmp.eq.s32.totalorder %v2003_v45, %v985_v62  ;;  %vm994_vm15 = vcmp.eq.s32.totalorder %v1848_v3, %v965_v41  ;;  %vm996_vm0 = vcmp.eq.s32.totalorder %v1840_v13, %v965_v41  ;;  %vm997_vm1 = vcmp.eq.s32.totalorder %v1836_v14, %v985_v62 }
 0x1ad   : >> { %v2538_v38 = vsel %vm986_vm8, inf, %v2432_v46  ;;  %v2541_v39 = vsel %vm987_vm9, inf, %v2435_v16  ;;  %v2544_v55 = vsel %vm988_vm7, inf, %v2438_v31  ;;  %v2547_v53 = vsel %vm989_vm11, inf, %v2441_v1 }
 0x1ae   : >> { %v2550_v48 = vsel %vm990_vm10, inf, %v2444_v11  ;;  %v2553_v43 = vsel %vm991_vm12, inf, %v2447_v47  ;;  %v2556_v59 = vsel %vm992_vm13, inf, %v2450_v24  ;;  %vm995_vm3 = vcmp.eq.s32.totalorder %v1844_v15, %v985_v62 }
 0x1af   : >> { %v2560_v46 = vsel %vm993_vm14, inf, %v2454_v51  ;;  %v2563_v16 = vsel %vm994_vm15, inf, %v2457_v52  ;;  %v2566_v31 = vsel %vm996_vm0, inf, %v2460_v21  ;;  %v2569_v1 = vsel %vm997_vm1, inf, %v2463_v22 }
 0x1b0   : >> { %v1010_v11 = vmin.f32 %v2538_v38, %v2550_v48  ;;  %v1011_v47 = vmin.f32 %v2544_v55, %v2556_v59  ;;  %v1013_v24 = vsel %vm452_vm2, %v2566_v31, inf  ;;  %v1022_v51 = vmin.f32 %v2541_v39, %v2553_v43 }
 0x1b1   : >> { %v1023_v52 = vmin.f32 %v2547_v53, %v2560_v46  ;;  %v1025_v21 = vsel %vm452_vm2, %v2569_v1, inf  ;;  %v2585_v22 = vsel %vm1442_vm6, %v2479_v54, %v965_v41  ;;  %v2588_v60 = vsel %vm995_vm3, inf, %v2482_v56 }
 0x1b2   : >> { %v1012_v23 = vmin.f32 %v1010_v11, %v2563_v16  ;;  %v1014_v50 = vmin.f32 %v1011_v47, %v1013_v24  ;;  %v2593_v57 = vsel %vm1442_vm6, %v2487_v49, %v985_v62  ;;  %v1024_v58 = vmin.f32 %v1022_v51, %v2588_v60 }
 0x1b3   : >> { %v1026_v61 = vmin.f32 %v1023_v52, %v1025_v21 }
 0x1b4   : >> { %v1015_v8 = vmin.f32 %v1012_v23, %v1014_v50 }
 0x1b5   : >> { %v1027_v63 = vmin.f32 %v1024_v58, %v1026_v61 }
 0x1b6   : >> { %v1016_v26 = vrot.slane %v1015_v8, 4 }
 0x1b7   : >> { %v1028_v27 = vrot.slane %v1027_v63, 4 }
 0x1b8   : >> { %v1017_v17 = vmin.f32 %v1015_v8, %v1016_v26 }
 0x1b9   : >> { %v1029_v54 = vmin.f32 %v1027_v63, %v1028_v27 }
 0x1ba   : >> { %v1018_v28 = vrot.slane %v1017_v17, 2 }
 0x1bb   : >> { %v1030_v20 = vrot.slane %v1029_v54, 2 }
 0x1bc   : >> { %v1019_v56 = vmin.f32 %v1017_v17, %v1018_v28 }
 0x1bd   : >> { %v1031_v29 = vmin.f32 %v1029_v54, %v1030_v20 }
 0x1be   : >> { %v1020_v30 = vrot.slane %v1019_v56, 1 }
 0x1bf   : >> { %v1032_v32 = vrot.slane %v1031_v29, 1 }
 0x1c0   : >> { %v1021_v34 = vmin.f32 %v1019_v56, %v1020_v30 }
 0x1c1   : >> { %v1033_v18 = vmin.f32 %v1031_v29, %v1032_v32 }
 0x1c2   : >> { %vm1034_vm6 = vcmp.le.f32.partialorder %v2538_v38, %v1021_v34  ;;  %vm1036_vm5 = vcmp.le.f32.partialorder %v2544_v55, %v1021_v34  ;;  %vm1038_vm8 = vcmp.le.f32.partialorder %v2550_v48, %v1021_v34  ;;  %vm1040_vm7 = vcmp.le.f32.partialorder %v2556_v59, %v1021_v34 }
 0x1c3   : >> { %vm1035_vm10 = vcmp.le.f32.partialorder %v2541_v39, %v1033_v18  ;;  %vm1037_vm9 = vcmp.le.f32.partialorder %v2547_v53, %v1033_v18  ;;  %vm1039_vm11 = vcmp.le.f32.partialorder %v2553_v43, %v1033_v18  ;;  %vm1041_vm12 = vcmp.le.f32.partialorder %v2560_v46, %v1033_v18 }
 0x1c4   : >> { %vm1042_vm13 = vcmp.le.f32.partialorder %v2563_v16, %v1021_v34  ;;  %vm1043_vm14 = vcmp.le.f32.partialorder %v2588_v60, %v1033_v18  ;;  %vm1044_vm15 = vcmp.le.f32.partialorder %v2566_v31, %v1021_v34  ;;  %vm1045_vm0 = vcmp.le.f32.partialorder %v2569_v1, %v1033_v18 }
 0x1c5   : >> { %v1046_v49 = vsel %vm1034_vm6, %v1992_v36, 2147483647  ;;  %v1047_v12 = vsel %vm1035_vm10, %v1992_v36, 2147483647  ;;  %v1048_v35 = vsel %vm1036_vm5, %v1995_v37, 2147483647  ;;  %v2613_v40 = vsel %vm1445_vm4, %v2507_v42, %v1021_v34 }
 0x1c6   : >> { %v1049_v33 = vsel %vm1037_vm9, %v1995_v37, 2147483647  ;;  %v1050_v25 = vsel %vm1038_vm8, %v2000_v44, 2147483647  ;;  %v1051_v41 = vsel %vm1039_vm11, %v2000_v44, 2147483647  ;;  %v2620_v62 = vsel %vm1445_vm4, %v2514_v19, %v1033_v18 }
 0x1c7   : >> { %v1052_v11 = vsel %vm1040_vm7, %v2003_v45, 2147483647  ;;  %v1053_v47 = vsel %vm1041_vm12, %v2003_v45, 2147483647  ;;  %v1054_v24 = vsel %vm1042_vm13, %v1848_v3, 2147483647  ;;  %vm1058_vm1 = vcmp.lt.s32.totalorder %v1046_v49, %v1050_v25 }
 0x1c8   : >> { %v1055_v42 = vsel %vm1043_vm14, %v1844_v15, 2147483647  ;;  %v1056_v51 = vsel %vm1044_vm15, %v1840_v13, 2147483647  ;;  %v1057_v52 = vsel %vm1045_vm0, %v1836_v14, 2147483647  ;;  %v1059_v21 = vsel %vm1058_vm1, %v1046_v49, %v1050_v25 }
 0x1c9   : >> { %vm1060_vm3 = vcmp.lt.s32.totalorder %v1048_v35, %v1052_v11  ;;  %vm1062_vm6 = vcmp.lt.s32.totalorder %v1059_v21, %v1054_v24  ;;  %v1064_v19 = vsel %vm452_vm2, %v1056_v51, 2147483647  ;;  %vm1078_vm5 = vcmp.lt.s32.totalorder %v1047_v12, %v1051_v41 }
 0x1ca   : >> { %v1061_v23 = vsel %vm1060_vm3, %v1048_v35, %v1052_v11  ;;  %v1063_v50 = vsel %vm1062_vm6, %v1059_v21, %v1054_v24  ;;  %v1079_v58 = vsel %vm1078_vm5, %v1047_v12, %v1051_v41  ;;  %vm1080_vm8 = vcmp.lt.s32.totalorder %v1049_v33, %v1053_v47 }
 0x1cb   : >> { %vm1065_vm7 = vcmp.lt.s32.totalorder %v1061_v23, %v1064_v19  ;;  %v1081_v61 = vsel %vm1080_vm8, %v1049_v33, %v1053_v47  ;;  %vm1082_vm10 = vcmp.lt.s32.totalorder %v1079_v58, %v1055_v42  ;;  %v1084_v8 = vsel %vm452_vm2, %v1057_v52, 2147483647 }
 0x1cc   : >> { %v1066_v63 = vsel %vm1065_vm7, %v1061_v23, %v1064_v19  ;;  %v1083_v26 = vsel %vm1082_vm10, %v1079_v58, %v1055_v42  ;;  %vm1085_vm9 = vcmp.lt.s32.totalorder %v1081_v61, %v1084_v8 }
 0x1cd   : >> { %vm1067_vm11 = vcmp.lt.s32.totalorder %v1063_v50, %v1066_v63  ;;  %v1086_v27 = vsel %vm1085_vm9, %v1081_v61, %v1084_v8 }
 0x1ce   : >> { %v1068_v17 = vsel %vm1067_vm11, %v1063_v50, %v1066_v63  ;;  %vm1087_vm12 = vcmp.lt.s32.totalorder %v1083_v26, %v1086_v27 }
 0x1cf   : >> { %v1069_v54 = vrot.slane %v1068_v17, 4  ;;  %v1088_v28 = vsel %vm1087_vm12, %v1083_v26, %v1086_v27 }
 0x1d0   : >> { %v1089_v20 = vrot.slane %v1088_v28, 4 }
 0x1d1   : >> { %vm1070_vm13 = vcmp.lt.s32.totalorder %v1068_v17, %v1069_v54 }
 0x1d2   : >> { %v1071_v56 = vsel %vm1070_vm13, %v1068_v17, %v1069_v54  ;;  %vm1090_vm14 = vcmp.lt.s32.totalorder %v1088_v28, %v1089_v20 }
 0x1d3   : >> { %v1072_v29 = vrot.slane %v1071_v56, 2  ;;  %v1091_v30 = vsel %vm1090_vm14, %v1088_v28, %v1089_v20 }
 0x1d4   : >> { %v1092_v32 = vrot.slane %v1091_v30, 2 }
 0x1d5   : >> { %vm1073_vm15 = vcmp.lt.s32.totalorder %v1071_v56, %v1072_v29 }
 0x1d6   : >> { %v1074_v34 = vsel %vm1073_vm15, %v1071_v56, %v1072_v29  ;;  %vm1093_vm0 = vcmp.lt.s32.totalorder %v1091_v30, %v1092_v32 }
 0x1d7   : >> { %v1075_v18 = vrot.slane %v1074_v34, 1  ;;  %v1094_v49 = vsel %vm1093_vm0, %v1091_v30, %v1092_v32 }
 0x1d8   : >> { %v1095_v12 = vrot.slane %v1094_v49, 1 }
 0x1d9   : >> { %vm1076_vm1 = vcmp.lt.s32.totalorder %v1074_v34, %v1075_v18 }
 0x1da   : >> { %v1077_v35 = vsel %vm1076_vm1, %v1074_v34, %v1075_v18  ;;  %vm1096_vm3 = vcmp.lt.s32.totalorder %v1094_v49, %v1095_v12  ;;  %vm1448_vm1 = vcmask 1045504  }
 0x1db   : >> { %v1097_v33 = vsel %vm1096_vm3, %v1094_v49, %v1095_v12  ;;  %vm1098_vm6 = vcmp.eq.s32.totalorder %v1992_v36, %v1077_v35  ;;  %vm1100_vm5 = vcmp.eq.s32.totalorder %v1995_v37, %v1077_v35  ;;  %vm1102_vm8 = vcmp.eq.s32.totalorder %v2000_v44, %v1077_v35 }
 0x1dc   : >> { %vm1099_vm7 = vcmp.eq.s32.totalorder %v1992_v36, %v1097_v33  ;;  %vm1101_vm10 = vcmp.eq.s32.totalorder %v1995_v37, %v1097_v33  ;;  %vm1103_vm9 = vcmp.eq.s32.totalorder %v2000_v44, %v1097_v33  ;;  %vm1104_vm11 = vcmp.eq.s32.totalorder %v2003_v45, %v1077_v35 }
 0x1dd   : >> { %vm1105_vm12 = vcmp.eq.s32.totalorder %v2003_v45, %v1097_v33  ;;  %vm1106_vm13 = vcmp.eq.s32.totalorder %v1848_v3, %v1077_v35  ;;  %vm1108_vm14 = vcmp.eq.s32.totalorder %v1840_v13, %v1077_v35  ;;  %vm1109_vm15 = vcmp.eq.s32.totalorder %v1836_v14, %v1097_v33 }
 0x1de   : >> { %v2644_v25 = vsel %vm1098_vm6, inf, %v2538_v38  ;;  %v2647_v41 = vsel %vm1099_vm7, inf, %v2541_v39  ;;  %v2650_v11 = vsel %vm1100_vm5, inf, %v2544_v55  ;;  %v2653_v47 = vsel %vm1101_vm10, inf, %v2547_v53 }
 0x1df   : >> { %v2656_v24 = vsel %vm1102_vm8, inf, %v2550_v48  ;;  %v2659_v42 = vsel %vm1103_vm9, inf, %v2553_v43  ;;  %v2662_v51 = vsel %vm1104_vm11, inf, %v2556_v59  ;;  %vm1107_vm0 = vcmp.eq.s32.totalorder %v1844_v15, %v1097_v33 }
 0x1e0   : >> { %v2666_v38 = vsel %vm1105_vm12, inf, %v2560_v46  ;;  %v2669_v39 = vsel %vm1106_vm13, inf, %v2563_v16  ;;  %v2672_v55 = vsel %vm1108_vm14, inf, %v2566_v31  ;;  %v2675_v53 = vsel %vm1109_vm15, inf, %v2569_v1 }
 0x1e1   : >> { %v1122_v48 = vmin.f32 %v2644_v25, %v2656_v24  ;;  %v1123_v43 = vmin.f32 %v2650_v11, %v2662_v51  ;;  %v1125_v59 = vsel %vm452_vm2, %v2672_v55, inf  ;;  %v1134_v46 = vmin.f32 %v2647_v41, %v2659_v42 }
 0x1e2   : >> { %v1135_v16 = vmin.f32 %v2653_v47, %v2666_v38  ;;  %v1137_v31 = vsel %vm452_vm2, %v2675_v53, inf  ;;  %v2691_v1 = vsel %vm1445_vm4, %v2585_v22, %v1077_v35  ;;  %v2694_v52 = vsel %vm1107_vm0, inf, %v2588_v60 }
 0x1e3   : >> { %v1124_v21 = vmin.f32 %v1122_v48, %v2669_v39  ;;  %v1126_v19 = vmin.f32 %v1123_v43, %v1125_v59  ;;  %v2699_v23 = vsel %vm1445_vm4, %v2593_v57, %v1097_v33  ;;  %v1136_v50 = vmin.f32 %v1134_v46, %v2694_v52 }
 0x1e4   : >> { %v1138_v58 = vmin.f32 %v1135_v16, %v1137_v31 }
 0x1e5   : >> { %v1127_v61 = vmin.f32 %v1124_v21, %v1126_v19 }
 0x1e6   : >> { %v1139_v8 = vmin.f32 %v1136_v50, %v1138_v58 }
 0x1e7   : >> { %v1128_v63 = vrot.slane %v1127_v61, 4 }
 0x1e8   : >> { %v1140_v26 = vrot.slane %v1139_v8, 4 }
 0x1e9   : >> { %v1129_v27 = vmin.f32 %v1127_v61, %v1128_v63 }
 0x1ea   : >> { %v1141_v22 = vmin.f32 %v1139_v8, %v1140_v26 }
 0x1eb   : >> { %v1130_v17 = vrot.slane %v1129_v27, 2 }
 0x1ec   : >> { %v1142_v54 = vrot.slane %v1141_v22, 2 }
 0x1ed   : >> { %v1131_v60 = vmin.f32 %v1129_v27, %v1130_v17 }
 0x1ee   : >> { %v1143_v28 = vmin.f32 %v1141_v22, %v1142_v54 }
 0x1ef   : >> { %v1132_v20 = vrot.slane %v1131_v60, 1 }
 0x1f0   : >> { %v1144_v56 = vrot.slane %v1143_v28, 1 }
 0x1f1   : >> { %v1133_v29 = vmin.f32 %v1131_v60, %v1132_v20 }
 0x1f2   : >> { %v1145_v30 = vmin.f32 %v1143_v28, %v1144_v56 }
 0x1f3   : >> { %vm1146_vm4 = vcmp.le.f32.partialorder %v2644_v25, %v1133_v29  ;;  %vm1148_vm3 = vcmp.le.f32.partialorder %v2650_v11, %v1133_v29  ;;  %vm1150_vm6 = vcmp.le.f32.partialorder %v2656_v24, %v1133_v29  ;;  %vm1152_vm5 = vcmp.le.f32.partialorder %v2662_v51, %v1133_v29 }
 0x1f4   : >> { %vm1147_vm8 = vcmp.le.f32.partialorder %v2647_v41, %v1145_v30  ;;  %vm1149_vm7 = vcmp.le.f32.partialorder %v2653_v47, %v1145_v30  ;;  %vm1151_vm10 = vcmp.le.f32.partialorder %v2659_v42, %v1145_v30  ;;  %vm1153_vm9 = vcmp.le.f32.partialorder %v2666_v38, %v1145_v30 }
 0x1f5   : >> { %vm1154_vm11 = vcmp.le.f32.partialorder %v2669_v39, %v1133_v29  ;;  %vm1155_vm12 = vcmp.le.f32.partialorder %v2694_v52, %v1145_v30  ;;  %vm1156_vm13 = vcmp.le.f32.partialorder %v2672_v55, %v1133_v29  ;;  %vm1157_vm14 = vcmp.le.f32.partialorder %v2675_v53, %v1145_v30 }
 0x1f6   : >> { %v1158_v57 = vsel %vm1146_vm4, %v1992_v36, 2147483647  ;;  %v1159_v32 = vsel %vm1147_vm8, %v1992_v36, 2147483647  ;;  %v1160_v34 = vsel %vm1148_vm3, %v1995_v37, 2147483647  ;;  %v2719_v18 = vsel %vm1448_vm1, %v2613_v40, %v1133_v29 }
 0x1f7   : >> { %v1161_v49 = vsel %vm1149_vm7, %v1995_v37, 2147483647  ;;  %v1162_v12 = vsel %vm1150_vm6, %v2000_v44, 2147483647  ;;  %v1163_v35 = vsel %vm1151_vm10, %v2000_v44, 2147483647  ;;  %v2726_v33 = vsel %vm1448_vm1, %v2620_v62, %v1145_v30 }
 0x1f8   : >> { %v1164_v48 = vsel %vm1152_vm5, %v2003_v45, 2147483647  ;;  %v1165_v43 = vsel %vm1153_vm9, %v2003_v45, 2147483647  ;;  %v1166_v59 = vsel %vm1154_vm11, %v1848_v3, 2147483647  ;;  %vm1170_vm15 = vcmp.lt.s32.totalorder %v1158_v57, %v1162_v12 }
 0x1f9   : >> { %v1167_v40 = vsel %vm1155_vm12, %v1844_v15, 2147483647  ;;  %v1168_v46 = vsel %vm1156_vm13, %v1840_v13, 2147483647  ;;  %v1169_v16 = vsel %vm1157_vm14, %v1836_v14, 2147483647  ;;  %v1171_v31 = vsel %vm1170_vm15, %v1158_v57, %v1162_v12 }
 0x1fa   : >> { %vm1172_vm0 = vcmp.lt.s32.totalorder %v1160_v34, %v1164_v48  ;;  %vm1174_vm4 = vcmp.lt.s32.totalorder %v1171_v31, %v1166_v59  ;;  %v1176_v62 = vsel %vm452_vm2, %v1168_v46, 2147483647  ;;  %vm1190_vm3 = vcmp.lt.s32.totalorder %v1159_v32, %v1163_v35 }
 0x1fb   : >> { %v1173_v21 = vsel %vm1172_vm0, %v1160_v34, %v1164_v48  ;;  %v1175_v19 = vsel %vm1174_vm4, %v1171_v31, %v1166_v59  ;;  %v1191_v50 = vsel %vm1190_vm3, %v1159_v32, %v1163_v35  ;;  %vm1192_vm6 = vcmp.lt.s32.totalorder %v1161_v49, %v1165_v43 }
 0x1fc   : >> { %vm1177_vm5 = vcmp.lt.s32.totalorder %v1173_v21, %v1176_v62  ;;  %v1193_v58 = vsel %vm1192_vm6, %v1161_v49, %v1165_v43  ;;  %vm1194_vm8 = vcmp.lt.s32.totalorder %v1191_v50, %v1167_v40  ;;  %v1196_v61 = vsel %vm452_vm2, %v1169_v16, 2147483647 }
 0x1fd   : >> { %v1178_v8 = vsel %vm1177_vm5, %v1173_v21, %v1176_v62  ;;  %v1195_v63 = vsel %vm1194_vm8, %v1191_v50, %v1167_v40  ;;  %vm1197_vm7 = vcmp.lt.s32.totalorder %v1193_v58, %v1196_v61 }
 0x1fe   : >> { %vm1179_vm10 = vcmp.lt.s32.totalorder %v1175_v19, %v1178_v8  ;;  %v1198_v26 = vsel %vm1197_vm7, %v1193_v58, %v1196_v61 }
 0x1ff   : >> { %v1180_v27 = vsel %vm1179_vm10, %v1175_v19, %v1178_v8  ;;  %vm1199_vm9 = vcmp.lt.s32.totalorder %v1195_v63, %v1198_v26 }
 0x200   : >> { %v1181_v22 = vrot.slane %v1180_v27, 4  ;;  %v1200_v17 = vsel %vm1199_vm9, %v1195_v63, %v1198_v26 }
 0x201   : >> { %v1201_v54 = vrot.slane %v1200_v17, 4 }
 0x202   : >> { %vm1182_vm11 = vcmp.lt.s32.totalorder %v1180_v27, %v1181_v22 }
 0x203   : >> { %v1183_v60 = vsel %vm1182_vm11, %v1180_v27, %v1181_v22  ;;  %vm1202_vm12 = vcmp.lt.s32.totalorder %v1200_v17, %v1201_v54 }
 0x204   : >> { %v1184_v28 = vrot.slane %v1183_v60, 2  ;;  %v1203_v20 = vsel %vm1202_vm12, %v1200_v17, %v1201_v54 }
 0x205   : >> { %v1204_v56 = vrot.slane %v1203_v20, 2 }
 0x206   : >> { %vm1185_vm13 = vcmp.lt.s32.totalorder %v1183_v60, %v1184_v28 }
 0x207   : >> { %v1186_v29 = vsel %vm1185_vm13, %v1183_v60, %v1184_v28  ;;  %vm1205_vm14 = vcmp.lt.s32.totalorder %v1203_v20, %v1204_v56 }
 0x208   : >> { %v1187_v30 = vrot.slane %v1186_v29, 1  ;;  %v1206_v57 = vsel %vm1205_vm14, %v1203_v20, %v1204_v56 }
 0x209   : >> { %v1207_v32 = vrot.slane %v1206_v57, 1 }
 0x20a   : >> { %vm1188_vm15 = vcmp.lt.s32.totalorder %v1186_v29, %v1187_v30 }
 0x20b   : >> { %v1189_v34 = vsel %vm1188_vm15, %v1186_v29, %v1187_v30  ;;  %vm1208_vm0 = vcmp.lt.s32.totalorder %v1206_v57, %v1207_v32  ;;  %vm1451_vm15 = vcmask 1046528  }
 0x20c   : >> { %v1209_v49 = vsel %vm1208_vm0, %v1206_v57, %v1207_v32  ;;  %vm1210_vm4 = vcmp.eq.s32.totalorder %v1992_v36, %v1189_v34  ;;  %vm1212_vm3 = vcmp.eq.s32.totalorder %v1995_v37, %v1189_v34  ;;  %vm1214_vm6 = vcmp.eq.s32.totalorder %v2000_v44, %v1189_v34 }
 0x20d   : >> { %vm1211_vm5 = vcmp.eq.s32.totalorder %v1992_v36, %v1209_v49  ;;  %vm1213_vm8 = vcmp.eq.s32.totalorder %v1995_v37, %v1209_v49  ;;  %vm1215_vm7 = vcmp.eq.s32.totalorder %v2000_v44, %v1209_v49  ;;  %vm1216_vm10 = vcmp.eq.s32.totalorder %v2003_v45, %v1189_v34 }
 0x20e   : >> { %vm1217_vm9 = vcmp.eq.s32.totalorder %v2003_v45, %v1209_v49  ;;  %vm1218_vm11 = vcmp.eq.s32.totalorder %v1848_v3, %v1189_v34  ;;  %vm1220_vm12 = vcmp.eq.s32.totalorder %v1840_v13, %v1189_v34  ;;  %vm1221_vm13 = vcmp.eq.s32.totalorder %v1836_v14, %v1209_v49 }
 0x20f   : >> { %v2750_v12 = vsel %vm1210_vm4, inf, %v2644_v25  ;;  %v2753_v35 = vsel %vm1211_vm5, inf, %v2647_v41  ;;  %v2756_v48 = vsel %vm1212_vm3, inf, %v2650_v11  ;;  %v2759_v43 = vsel %vm1213_vm8, inf, %v2653_v47 }
 0x210   : >> { %v2762_v59 = vsel %vm1214_vm6, inf, %v2656_v24  ;;  %v2765_v40 = vsel %vm1215_vm7, inf, %v2659_v42  ;;  %v2768_v46 = vsel %vm1216_vm10, inf, %v2662_v51  ;;  %vm1219_vm14 = vcmp.eq.s32.totalorder %v1844_v15, %v1209_v49 }
 0x211   : >> { %v2772_v25 = vsel %vm1217_vm9, inf, %v2666_v38  ;;  %v2775_v41 = vsel %vm1218_vm11, inf, %v2669_v39  ;;  %v2778_v11 = vsel %vm1220_vm12, inf, %v2672_v55  ;;  %v2781_v47 = vsel %vm1221_vm13, inf, %v2675_v53 }
 0x212   : >> { %v1234_v24 = vmin.f32 %v2750_v12, %v2762_v59  ;;  %v1235_v42 = vmin.f32 %v2756_v48, %v2768_v46  ;;  %v1237_v51 = vsel %vm452_vm2, %v2778_v11, inf  ;;  %v1246_v38 = vmin.f32 %v2753_v35, %v2765_v40 }
 0x213   : >> { %v1247_v39 = vmin.f32 %v2759_v43, %v2772_v25  ;;  %v1249_v55 = vsel %vm452_vm2, %v2781_v47, inf  ;;  %v2797_v53 = vsel %vm1448_vm1, %v2691_v1, %v1189_v34  ;;  %v2800_v16 = vsel %vm1219_vm14, inf, %v2694_v52 }
 0x214   : >> { %v1236_v31 = vmin.f32 %v1234_v24, %v2775_v41  ;;  %v1238_v62 = vmin.f32 %v1235_v42, %v1237_v51  ;;  %v2805_v21 = vsel %vm1448_vm1, %v2699_v23, %v1209_v49  ;;  %v1248_v19 = vmin.f32 %v1246_v38, %v2800_v16 }
 0x215   : >> { %v1250_v50 = vmin.f32 %v1247_v39, %v1249_v55 }
 0x216   : >> { %v1239_v58 = vmin.f32 %v1236_v31, %v1238_v62 }
 0x217   : >> { %v1251_v61 = vmin.f32 %v1248_v19, %v1250_v50 }
 0x218   : >> { %v1240_v8 = vrot.slane %v1239_v58, 4 }
 0x219   : >> { %v1252_v63 = vrot.slane %v1251_v61, 4 }
 0x21a   : >> { %v1241_v26 = vmin.f32 %v1239_v58, %v1240_v8 }
 0x21b   : >> { %v1253_v1 = vmin.f32 %v1251_v61, %v1252_v63 }
 0x21c   : >> { %v1242_v27 = vrot.slane %v1241_v26, 2 }
 0x21d   : >> { %v1254_v22 = vrot.slane %v1253_v1, 2 }
 0x21e   : >> { %v1243_v52 = vmin.f32 %v1241_v26, %v1242_v27 }
 0x21f   : >> { %v1255_v17 = vmin.f32 %v1253_v1, %v1254_v22 }
 0x220   : >> { %v1244_v54 = vrot.slane %v1243_v52, 1 }
 0x221   : >> { %v1256_v60 = vrot.slane %v1255_v17, 1 }
 0x222   : >> { %v1245_v28 = vmin.f32 %v1243_v52, %v1244_v54 }
 0x223   : >> { %v1257_v20 = vmin.f32 %v1255_v17, %v1256_v60 }
 0x224   : >> { %vm1258_vm1 = vcmp.le.f32.partialorder %v2750_v12, %v1245_v28  ;;  %vm1260_vm0 = vcmp.le.f32.partialorder %v2756_v48, %v1245_v28  ;;  %vm1262_vm4 = vcmp.le.f32.partialorder %v2762_v59, %v1245_v28  ;;  %vm1264_vm3 = vcmp.le.f32.partialorder %v2768_v46, %v1245_v28 }
 0x225   : >> { %vm1259_vm6 = vcmp.le.f32.partialorder %v2753_v35, %v1257_v20  ;;  %vm1261_vm5 = vcmp.le.f32.partialorder %v2759_v43, %v1257_v20  ;;  %vm1263_vm8 = vcmp.le.f32.partialorder %v2765_v40, %v1257_v20  ;;  %vm1265_vm7 = vcmp.le.f32.partialorder %v2772_v25, %v1257_v20 }
 0x226   : >> { %vm1266_vm10 = vcmp.le.f32.partialorder %v2775_v41, %v1245_v28  ;;  %vm1267_vm9 = vcmp.le.f32.partialorder %v2800_v16, %v1257_v20  ;;  %vm1268_vm11 = vcmp.le.f32.partialorder %v2778_v11, %v1245_v28  ;;  %vm1269_vm12 = vcmp.le.f32.partialorder %v2781_v47, %v1257_v20 }
 0x227   : >> { %v1270_v23 = vsel %vm1258_vm1, %v1992_v36, 2147483647  ;;  %v1271_v56 = vsel %vm1259_vm6, %v1992_v36, 2147483647  ;;  %v1272_v29 = vsel %vm1260_vm0, %v1995_v37, 2147483647  ;;  %v2825_v17 = vsel %vm1451_vm15, %v2719_v18, %v1245_v28  }
 0x228   : >> { %v1273_v30 = vsel %vm1261_vm5, %v1995_v37, 2147483647  ;;  %v1274_v57 = vsel %vm1262_vm4, %v2000_v44, 2147483647  ;;  %v1275_v32 = vsel %vm1263_vm8, %v2000_v44, 2147483647  ;;  %v2832_v34 = vsel %vm1451_vm15, %v2726_v33, %v1257_v20  }
 0x229   : >> { %v1276_v49 = vsel %vm1264_vm3, %v2003_v45, 2147483647  ;;  %v1277_v24 = vsel %vm1265_vm7, %v2003_v45, 2147483647  ;;  %v1278_v42 = vsel %vm1266_vm10, %v1848_v3, 2147483647  ;;  %vm1282_vm13 = vcmp.lt.s32.totalorder %v1270_v23, %v1274_v57 }
 0x22a   : >> { %v1279_v18 = vsel %vm1267_vm9, %v1844_v15, 2147483647  ;;  %v1280_v51 = vsel %vm1268_vm11, %v1840_v13, 2147483647  ;;  %v1281_v38 = vsel %vm1269_vm12, %v1836_v14, 2147483647  ;;  %v1283_v39 = vsel %vm1282_vm13, %v1270_v23, %v1274_v57 }
 0x22b   : >> { %vm1284_vm14 = vcmp.lt.s32.totalorder %v1272_v29, %v1276_v49  ;;  %vm1286_vm1 = vcmp.lt.s32.totalorder %v1283_v39, %v1278_v42  ;;  %v1288_v33 = vsel %vm452_vm2, %v1280_v51, 2147483647  ;;  %vm1302_vm0 = vcmp.lt.s32.totalorder %v1271_v56, %v1275_v32 }
 0x22c   : >> { %v1285_v55 = vsel %vm1284_vm14, %v1272_v29, %v1276_v49  ;;  %v1287_v31 = vsel %vm1286_vm1, %v1283_v39, %v1278_v42  ;;  %v1303_v62 = vsel %vm1302_vm0, %v1271_v56, %v1275_v32  ;;  %vm1304_vm4 = vcmp.lt.s32.totalorder %v1273_v30, %v1277_v24 }
 0x22d   : >> { %vm1289_vm3 = vcmp.lt.s32.totalorder %v1285_v55, %v1288_v33  ;;  %v1305_v19 = vsel %vm1304_vm4, %v1273_v30, %v1277_v24  ;;  %vm1306_vm6 = vcmp.lt.s32.totalorder %v1303_v62, %v1279_v18  ;;  %v1308_v50 = vsel %vm452_vm2, %v1281_v38, 2147483647 }
 0x22e   : >> { %v1290_v58 = vsel %vm1289_vm3, %v1285_v55, %v1288_v33  ;;  %v1307_v61 = vsel %vm1306_vm6, %v1303_v62, %v1279_v18  ;;  %vm1309_vm5 = vcmp.lt.s32.totalorder %v1305_v19, %v1308_v50 }
 0x22f   : >> { %vm1291_vm8 = vcmp.lt.s32.totalorder %v1287_v31, %v1290_v58  ;;  %v1310_v8 = vsel %vm1309_vm5, %v1305_v19, %v1308_v50 }
 0x230   : >> { %v1292_v63 = vsel %vm1291_vm8, %v1287_v31, %v1290_v58  ;;  %vm1311_vm7 = vcmp.lt.s32.totalorder %v1307_v61, %v1310_v8 }
 0x231   : >> { %v1293_v26 = vrot.slane %v1292_v63, 4  ;;  %v1312_v1 = vsel %vm1311_vm7, %v1307_v61, %v1310_v8 }
 0x232   : >> { %v1313_v27 = vrot.slane %v1312_v1, 4 }
 0x233   : >> { %vm1294_vm10 = vcmp.lt.s32.totalorder %v1292_v63, %v1293_v26 }
 0x234   : >> { %v1295_v22 = vsel %vm1294_vm10, %v1292_v63, %v1293_v26  ;;  %vm1314_vm9 = vcmp.lt.s32.totalorder %v1312_v1, %v1313_v27 }
 0x235   : >> { %v1296_v52 = vrot.slane %v1295_v22, 2  ;;  %v1315_v54 = vsel %vm1314_vm9, %v1312_v1, %v1313_v27 }
 0x236   : >> { %v1316_v60 = vrot.slane %v1315_v54, 2 }
 0x237   : >> { %vm1297_vm11 = vcmp.lt.s32.totalorder %v1295_v22, %v1296_v52 }
 0x238   : >> { %v1298_v28 = vsel %vm1297_vm11, %v1295_v22, %v1296_v52  ;;  %vm1317_vm12 = vcmp.lt.s32.totalorder %v1315_v54, %v1316_v60 }
 0x239   : >> { %v1299_v20 = vrot.slane %v1298_v28, 1  ;;  %v1318_v23 = vsel %vm1317_vm12, %v1315_v54, %v1316_v60 }
 0x23a   : >> { %v1319_v56 = vrot.slane %v1318_v23, 1 }
 0x23b   : >> { %vm1300_vm13 = vcmp.lt.s32.totalorder %v1298_v28, %v1299_v20 }
 0x23c   : >> { %v1301_v29 = vsel %vm1300_vm13, %v1298_v28, %v1299_v20  ;;  %vm1320_vm14 = vcmp.lt.s32.totalorder %v1318_v23, %v1319_v56 }
 0x23d   : >> { %v1321_v30 = vsel %vm1320_vm14, %v1318_v23, %v1319_v56  ;;  %vm1322_vm1 = vcmp.eq.s32.totalorder %v1992_v36, %v1301_v29  ;;  %vm1324_vm0 = vcmp.eq.s32.totalorder %v1995_v37, %v1301_v29  ;;  %vm1326_vm4 = vcmp.eq.s32.totalorder %v2000_v44, %v1301_v29 }
 0x23e   : >> { %vm1323_vm3 = vcmp.eq.s32.totalorder %v1992_v36, %v1321_v30  ;;  %vm1325_vm6 = vcmp.eq.s32.totalorder %v1995_v37, %v1321_v30  ;;  %vm1327_vm5 = vcmp.eq.s32.totalorder %v2000_v44, %v1321_v30  ;;  %vm1328_vm8 = vcmp.eq.s32.totalorder %v2003_v45, %v1301_v29 }
 0x23f   : >> { %vm1329_vm7 = vcmp.eq.s32.totalorder %v2003_v45, %v1321_v30  ;;  %vm1330_vm10 = vcmp.eq.s32.totalorder %v1848_v3, %v1301_v29  ;;  %vm1332_vm9 = vcmp.eq.s32.totalorder %v1840_v13, %v1301_v29  ;;  %vm1333_vm11 = vcmp.eq.s32.totalorder %v1836_v14, %v1321_v30 }
 0x240   : >> { %v1334_v57 = vsel %vm1322_vm1, inf, %v2750_v12  ;;  %v1335_v32 = vsel %vm1323_vm3, inf, %v2753_v35  ;;  %v1336_v49 = vsel %vm1324_vm0, inf, %v2756_v48  ;;  %v1337_v24 = vsel %vm1325_vm6, inf, %v2759_v43 }
 0x241   : >> { %v1338_v42 = vsel %vm1326_vm4, inf, %v2762_v59  ;;  %v1339_v18 = vsel %vm1327_vm5, inf, %v2765_v40  ;;  %v1340_v51 = vsel %vm1328_vm8, inf, %v2768_v46  ;;  %vm1331_vm12 = vcmp.eq.s32.totalorder %v1844_v15, %v1321_v30 }
 0x242   : >> { %v1341_v38 = vsel %vm1329_vm7, inf, %v2772_v25  ;;  %v1342_v39 = vsel %vm1330_vm10, inf, %v2775_v41  ;;  %v1344_v12 = vsel %vm1332_vm9, inf, %v2778_v11  ;;  %v1345_v35 = vsel %vm1333_vm11, inf, %v2781_v47 }
 0x243   : >> { %v1346_v33 = vmin.f32 %v1334_v57, %v1338_v42  ;;  %v1347_v48 = vmin.f32 %v1336_v49, %v1340_v51  ;;  %v1349_v43 = vsel %vm452_vm2, %v1344_v12, inf  ;;  %v1358_v55 = vmin.f32 %v1335_v32, %v1339_v18 }
 0x244   : >> { %v1359_v59 = vmin.f32 %v1337_v24, %v1341_v38  ;;  %v1361_v40 = vsel %vm452_vm2, %v1345_v35, inf  ;;  %v2871_v46 = vsel %vm1451_vm15, %v2797_v53, %v1301_v29   ;;  %v1343_v25 = vsel %vm1331_vm12, inf, %v2800_v16 }
 0x245   : >> { %v1348_v31 = vmin.f32 %v1346_v33, %v1342_v39  ;;  %v1350_v41 = vmin.f32 %v1347_v48, %v1349_v43  ;;  %v2876_v11 = vsel %vm1451_vm15, %v2805_v21, %v1321_v30   ;;  %v1360_v62 = vmin.f32 %v1358_v55, %v1343_v25  ;;  %1472 = vst [vmem:[#allocation3] sm:$0xff] (%p264_p5), %v2871_v46 }
 0x246   : >> { %v2956_v47 = vmov %v2876_v11  ;;  %v1362_v19 = vmin.f32 %v1359_v59, %v1361_v40 }
 0x247   : >> { %v1351_v50 = vmin.f32 %v1348_v31, %v1350_v41  ;;  %1473 = vst [vmem:[#allocation3 + $0x8] sm:$0xff] (%p264_p5), %v2956_v47 }
 0x248   : >> { %v1363_v58 = vmin.f32 %v1360_v62, %v1362_v19 }
 0x249   : >> { %v1352_v61 = vrot.slane %v1351_v50, 4 }
 0x24a   : >> { %v1364_v8 = vrot.slane %v1363_v58, 4 }
 0x24b   : >> { %v1353_v63 = vmin.f32 %v1351_v50, %v1352_v61 }
 0x24c   : >> { %v1365_v26 = vmin.f32 %v1363_v58, %v1364_v8 }
 0x24d   : >> { %v1354_v1 = vrot.slane %v1353_v63, 2 }
 0x24e   : >> { %v1366_v27 = vrot.slane %v1365_v26, 2  ;;  %v1479_v17 = vld [vmem:[#allocation3] ss:$8 sm:$0x3] (%p264_p5) }
 0x24f   : >> { %v1355_v53 = vmin.f32 %v1353_v63, %v1354_v1  ;;  %v1492_v2 = vld [vmem:[#allocation3 + $0x4] ss:$8 sm:$0x3] (%p264_p5)  ;;  %v1497_v4 = vld [vmem:[#allocation3 + $0x6] ss:$8 sm:$0x3] (%p264_p5) }
 0x250   : >> { %v1367_v22 = vmin.f32 %v1365_v26, %v1366_v27 }
 0x251   : >> { %v1356_v52 = vrot.slane %v1355_v53, 1 }
 0x252   : >> { %v1368_v16 = vrot.slane %v1367_v22, 1 }
 0x253   : >> { %v2878_v11 = vmin.f32 %v1355_v53, %v1356_v52  }
 0x254   : >> { %v2880_v60 = vmin.f32 %v1367_v22, %v1368_v16   ;;  %v2964_v16 = vmov %v2832_v34  ;;  %v1487_v34 = vld [vmem:[#allocation3 + $0x2] ss:$8 sm:$0x3] (%p264_p5) }
 0x255   : >> { %v2957_v54 = vmov %v2878_v11 }
 0x256   : >> { %vm1370_vm15 = vcmp.le.f32.partialorder %v1334_v57, %v2957_v54  ;;  %vm1372_vm13 = vcmp.le.f32.partialorder %v1336_v49, %v2957_v54  ;;  %vm1374_vm14 = vcmp.le.f32.partialorder %v1338_v42, %v2957_v54  ;;  %vm1371_vm1 = vcmp.le.f32.partialorder %v1335_v32, %v2880_v60  ;;  %1470 = vst [vmem:[#allocation2 + $0x10] sm:$0x1] (%p264_p5), %v2957_v54 }
 0x257   : >> { %vm1373_vm0 = vcmp.le.f32.partialorder %v1337_v24, %v2880_v60  ;;  %vm1375_vm4 = vcmp.le.f32.partialorder %v1339_v18, %v2880_v60  ;;  %vm1376_vm3 = vcmp.le.f32.partialorder %v1340_v51, %v2957_v54  ;;  %vm1377_vm6 = vcmp.le.f32.partialorder %v1341_v38, %v2880_v60  ;;  %1471 = vst [vmem:[#allocation2 + $0x18] sm:$0x1] (%p264_p5), %v2880_v60 }
 0x258   : >> { %vm1378_vm5 = vcmp.le.f32.partialorder %v1342_v39, %v2957_v54  ;;  %vm1379_vm8 = vcmp.le.f32.partialorder %v1343_v25, %v2880_v60  ;;  %vm1380_vm7 = vcmp.le.f32.partialorder %v1344_v12, %v2957_v54  ;;  %vm1381_vm10 = vcmp.le.f32.partialorder %v1345_v35, %v2880_v60 }
 0x259   : >> { %v1382_v21 = vsel %vm1370_vm15, %v1992_v36, 2147483647  ;;  %v1383_v28 = vsel %vm1371_vm1, %v1992_v36, 2147483647  ;;  %v1384_v20 = vsel %vm1372_vm13, %v1995_v37, 2147483647  ;;  %v2963_v11 = vmov %v2957_v54 }
 0x25a   : >> { %v1385_v23 = vsel %vm1373_vm0, %v1995_v37, 2147483647  ;;  %v1386_v56 = vsel %vm1374_vm14, %v2000_v44, 2147483647  ;;  %v1387_v29 = vsel %vm1375_vm4, %v2000_v44, 2147483647 }
 0x25b   : >> { %v1388_v30 = vsel %vm1376_vm3, %v2003_v45, 2147483647  ;;  %v1389_v57 = vsel %vm1377_vm6, %v2003_v45, 2147483647  ;;  %v1390_v32 = vsel %vm1378_vm5, %v1848_v3, 2147483647  ;;  %vm1394_vm9 = vcmp.lt.s32.totalorder %v1382_v21, %v1386_v56 }
 0x25c   : >> { %v1391_v49 = vsel %vm1379_vm8, %v1844_v15, 2147483647  ;;  %v1392_v24 = vsel %vm1380_vm7, %v1840_v13, 2147483647  ;;  %v1393_v36 = vsel %vm1381_vm10, %v1836_v14, 2147483647  ;;  %v1395_v42 = vsel %vm1394_vm9, %v1382_v21, %v1386_v56 }
 0x25d   : >> { %vm1396_vm11 = vcmp.lt.s32.totalorder %v1384_v20, %v1388_v30  ;;  %vm1398_vm12 = vcmp.lt.s32.totalorder %v1395_v42, %v1390_v32  ;;  %v1400_v37 = vsel %vm452_vm2, %v1392_v24, 2147483647  ;;  %vm1414_vm15 = vcmp.lt.s32.totalorder %v1383_v28, %v1387_v29 }
 0x25e   : >> { %v1397_v44 = vsel %vm1396_vm11, %v1384_v20, %v1388_v30  ;;  %v1399_v18 = vsel %vm1398_vm12, %v1395_v42, %v1390_v32  ;;  %v1415_v51 = vsel %vm1414_vm15, %v1383_v28, %v1387_v29  ;;  %vm1416_vm13 = vcmp.lt.s32.totalorder %v1385_v23, %v1389_v57 }
 0x25f   : >> { %vm1401_vm14 = vcmp.lt.s32.totalorder %v1397_v44, %v1400_v37  ;;  %v1417_v45 = vsel %vm1416_vm13, %v1385_v23, %v1389_v57  ;;  %vm1418_vm1 = vcmp.lt.s32.totalorder %v1415_v51, %v1391_v49  ;;  %v1420_v3 = vsel %vm452_vm2, %v1393_v36, 2147483647 }
 0x260   : >> { %v1402_v15 = vsel %vm1401_vm14, %v1397_v44, %v1400_v37  ;;  %v1419_v38 = vsel %vm1418_vm1, %v1415_v51, %v1391_v49  ;;  %vm1421_vm0 = vcmp.lt.s32.totalorder %v1417_v45, %v1420_v3  ;;  %vm1482_vm9 = vcmp.lt.s32.totalorder (%p264_p5), %v234_v0, 256 }
 0x261   : >> { %vm1403_vm4 = vcmp.lt.s32.totalorder %v1399_v18, %v1402_v15  ;;  %v1422_v13 = vsel %vm1421_vm0, %v1417_v45, %v1420_v3  ;;  %v2961_v3 = vmov %v2871_v46  ;;  %1484 = vst.msk [vmem:[%s1934_s24] ss:$8 sm:$0x3] (%p264_p5), %vm1482_vm9, %v1479_v17  ;;  %1659 = vst.msk [vmem:[%s1934_s24 + $0x1] ss:$8 sm:$0x3] (%p264_p5), %vm1482_vm9, %v1487_v34 }
 0x262   : >> { %v1404_v14 = vsel %vm1403_vm4, %v1399_v18, %v1402_v15  ;;  %vm1423_vm3 = vcmp.lt.s32.totalorder %v1419_v38, %v1422_v13  ;;  %v2960_v15 = vmov %v2956_v47  ;;  %1660 = vst.msk [vmem:[%s1934_s24 + $0x2] ss:$8 sm:$0x3] (%p264_p5), %vm1482_vm9, %v1492_v2  ;;  %1661 = vst.msk [vmem:[%s1934_s24 + $0x3] ss:$8 sm:$0x3] (%p264_p5), %vm1482_vm9, %v1497_v4 }
 0x263   : >> { %v1405_v39 = vrot.slane %v1404_v14, 4  ;;  %v1424_v12 = vsel %vm1423_vm3, %v1419_v38, %v1422_v13 }
 0x264   : >> { %v1425_v35 = vrot.slane %v1424_v12, 4 }
 0x265   : >> { %vm1406_vm6 = vcmp.lt.s32.totalorder %v1404_v14, %v1405_v39 }
 0x266   : >> { %v1407_v33 = vsel %vm1406_vm6, %v1404_v14, %v1405_v39  ;;  %vm1426_vm5 = vcmp.lt.s32.totalorder %v1424_v12, %v1425_v35 }
 0x267   : >> { %v1408_v48 = vrot.slane %v1407_v33, 2  ;;  %v1427_v43 = vsel %vm1426_vm5, %v1424_v12, %v1425_v35  ;;  %v2962_v12 = vmov %v2880_v60 }
 0x268   : >> { %v1428_v55 = vrot.slane %v1427_v43, 2 }
 0x269   : >> { %vm1409_vm8 = vcmp.lt.s32.totalorder %v1407_v33, %v1408_v48 }
 0x26a   : >> { %v1410_v59 = vsel %vm1409_vm8, %v1407_v33, %v1408_v48  ;;  %vm1429_vm7 = vcmp.lt.s32.totalorder %v1427_v43, %v1428_v55  ;;  %266 = sbr.rel (!%p264_p5) target bundleno = 23 (0x17), region = 87 }
 0x26b   : >> { %v1411_v40 = vrot.slane %v1410_v59, 1  ;;  %v1430_v25 = vsel %vm1429_vm7, %v1427_v43, %v1428_v55 }
 0x26c   : >> { %v1431_v31 = vrot.slane %v1430_v25, 1 }
 0x26d   : >> { %vm1412_vm2 = vcmp.lt.s32.totalorder %v1410_v59, %v1411_v40 }
 0x26e   : >> { %v1413_v41 = vsel %vm1412_vm2, %v1410_v59, %v1411_v40   ;;  %vm1432_vm10 = vcmp.lt.s32.totalorder %v1430_v25, %v1431_v31 }
 0x26f   : >> { %v1433_v62 = vsel %vm1432_vm10, %v1430_v25, %v1431_v31   ;;  %v2959_v13 = vmov %v1413_v41  ;;  %1474 = vst [vmem:[#allocation3 + $0x10] sm:$0x1] (%p264_p5), %v1413_v41 }
 0x270   : >> { %v2958_v14 = vmov %v1433_v62  ;;  %1475 = vst [vmem:[#allocation3 + $0x18] sm:$0x1] (%p264_p5), %v1433_v62 }
 0x277   : > { %v1502_v5 = vld [vmem:[#allocation3 + $0x10] ss:$8 sm:$0x3] }
 0x278   : > { %1662 = vst.msk [vmem:[%s1934_s24 + $0x4] ss:$8 sm:$0x3] %vm1482_vm9, %v1502_v5 }
 0x279 PF: > { %s12_s11 = sadd.s32 1, %s1832_s11   ;;  %s2965_s9 = smov %s1828_s10 }
 0x27a   : > { %p9_p6 = scmp.ge.s32.totalorder %s12_s11, 4   ;;  %s2966_s10 = smov %s2968_s12 }
 0x27c   :  { %11 = sbr.rel (!%p9_p6) target bundleno = 2 (0x2), region = 98 }

</bundles_post_ra>
